<compile_context>
chip_gen: v7x
topology: tpu7x:2x2x1
jax: 0.10.0
libtpu: 0.0.40
codegen_flags: <defaults>
</compile_context>

<pallas_src>
import numpy as np
import jax
import jax.numpy as jnp
from jax.experimental import pallas as pl
from jax.experimental.pallas import tpu as pltpu


_HIDDEN = (1024, 512, 256, 128)


def _round_up(x, m):
    return ((x + m - 1) // m) * m


# ---------------------------------------------------------------------------
# Kernel
# ---------------------------------------------------------------------------
def discriminator_kernel(x_ref,
                         w1_ref, b1_ref,
                         w2_ref, b2_ref,
                         w3_ref, b3_ref,
                         w4_ref, b4_ref,
                         w5_ref, b5_ref,
                         o_ref):
    """MLP: (F_pad -> 1024 -> 512 -> 256 -> 128 -> 1), LeakyReLU(0.2) x4, Sigmoid.

    Activations travel in bf16 between layers; matmuls accumulate in f32 on the
    MXU; activation/epilogue math is f32.
    """
    h = x_ref[...]                                    # bf16 (TB, F_pad)

    def linear_lrelu(h, w_ref, b_ref):
        y = jnp.dot(h, w_ref[...], preferred_element_type=jnp.float32)
        y = y + b_ref[...]
        y = jnp.where(y > 0, y, 0.2 * y)              # LeakyReLU(0.2) in f32
        return y.astype(jnp.bfloat16)

    h = linear_lrelu(h, w1_ref, b1_ref)
    h = linear_lrelu(h, w2_ref, b2_ref)
    h = linear_lrelu(h, w3_ref, b3_ref)
    h = linear_lrelu(h, w4_ref, b4_ref)

    # Final 128 -> 1 layer as a lane reduction (avoids a degenerate N=1 MXU op).
    logits = jnp.sum(h.astype(jnp.float32) * w5_ref[...],
                     axis=-1, keepdims=True) + b5_ref[...]

    # Sigmoid: exp and approximate reciprocal both issue on the EUP slot.
    e = jnp.exp(-logits)
    o_ref[...] = pl.reciprocal(1.0 + e, approx=True)


# ---------------------------------------------------------------------------
# Parameter construction / preparation
# ---------------------------------------------------------------------------
def init_discriminator_params(key, in_features):
    """PyTorch-nn.Linear-style init.  Weights stored as (fan_in, fan_out) so the
    kernel computes x @ W + b (equivalent to torch's x @ W_t.T + b)."""
    dims = [in_features, *_HIDDEN, 1]
    params = []
    for i in range(len(dims) - 1):
        fan_in, fan_out = dims[i], dims[i + 1]
        key, kw, kb = jax.random.split(key, 3)
        bound = 1.0 / np.sqrt(fan_in)
        w = jax.random.uniform(kw, (fan_in, fan_out), jnp.float32, -bound, bound)
        b = jax.random.uniform(kb, (fan_out,), jnp.float32, -bound, bound)
        params.append((w, b))
    return params


def prepare_kernel_params(params, in_features):
    """Pad W1's fan_in to a multiple of 128, cast hidden weights to bf16 and
    lay the final (128 -> 1) weight out as a lane-dense (1, 128) f32 row."""
    f_pad = _round_up(in_features, 128)
    prepared = []
    n_layers = len(params)
    for i, (w, b) in enumerate(params):
        if i == 0 and f_pad != in_features:
            w = jnp.pad(w, ((0, f_pad - in_features), (0, 0)))
        if i < n_layers - 1:
            prepared.append(jnp.asarray(w, jnp.bfloat16))
            prepared.append(jnp.asarray(b, jnp.float32).reshape(1, -1))
        else:
            prepared.append(jnp.asarray(w, jnp.float32).reshape(1, -1))   # (1, 128)
            prepared.append(jnp.asarray(b, jnp.float32).reshape(1, 1))    # (1, 1)
    return prepared, f_pad


# ---------------------------------------------------------------------------
# Wrapper
# ---------------------------------------------------------------------------
def discriminator_forward(img, kernel_params, in_features, f_pad):
    """img: NCHW (B, C, H, W). Returns (B, 1) sigmoid classification scores."""
    B = img.shape[0]
    x = img.reshape(B, -1).astype(jnp.float32)        # == img.view(B, -1)
    assert x.shape[1] == in_features

    # Zero-pad features to a multiple of 128 (matches zero-padded rows in W1).
    if f_pad != in_features:
        x = jnp.pad(x, ((0, 0), (0, f_pad - in_features)))

    # Batch tile: sublane-aligned for small batches, 128 once the batch is big
    # enough to actually feed the MXU.
    tb = 128 if B >= 128 else _round_up(B, 8)
    b_pad = _round_up(B, tb)
    if b_pad != B:
        x = jnp.pad(x, ((0, b_pad - B), (0, 0)))
    x = x.astype(jnp.bfloat16)

    grid = (b_pad // tb,)
    x_spec = pl.BlockSpec((tb, f_pad), lambda i: (i, 0))
    out_spec = pl.BlockSpec((tb, 1), lambda i: (i, 0))
    # Weights/biases: constant index_map -> loaded once, VMEM-resident across
    # all batch tiles.
    param_specs = [pl.BlockSpec(p.shape, lambda i: (0, 0)) for p in kernel_params]

    out = pl.pallas_call(
        discriminator_kernel,
        out_shape=jax.ShapeDtypeStruct((b_pad, 1), jnp.float32),
        grid=grid,
        in_specs=[x_spec] + param_specs,
        out_specs=out_spec,
        compiler_params=pltpu.CompilerParams(
            dimension_semantics=("parallel",),
            vmem_limit_bytes=24 << 20,
        ),
    )(x, *kernel_params)
    return out[:B]


# ---------------------------------------------------------------------------
# Pure-JAX reference (same bf16 weight path, exact sigmoid)
# ---------------------------------------------------------------------------
def reference_forward(img, kernel_params, in_features, f_pad):
    B = img.shape[0]
    x = img.reshape(B, -1).astype(jnp.float32)
    if f_pad != in_features:
        x = jnp.pad(x, ((0, 0), (0, f_pad - in_features)))
    h = x.astype(jnp.bfloat16)
    for i in range(4):
        w, b = kernel_params[2 * i], kernel_params[2 * i + 1]
        y = jnp.dot(h, w, preferred_element_type=jnp.float32) + b
        y = jnp.where(y > 0, y, 0.2 * y)
        h = y.astype(jnp.bfloat16)
    w5, b5 = kernel_params[8], kernel_params[9]
    logits = jnp.sum(h.astype(jnp.float32) * w5, axis=-1, keepdims=True) + b5
    return jax.nn.sigmoid(logits)


if __name__ == "__main__":
    # Small shapes consistent with the module: img_size = (C, H, W) = (1, 16, 16)
    img_size = (1, 16, 16)
    batch = 2
    in_features = int(np.prod(img_size))  # 256

    key = jax.random.PRNGKey(0)
    k_img, k_params = jax.random.split(key)
    img = jax.random.normal(k_img, (batch,) + img_size, jnp.float32)  # NCHW

    raw_params = init_discriminator_params(k_params, in_features)
    kernel_params, f_pad = prepare_kernel_params(raw_params, in_features)

    out = discriminator_forward(img, kernel_params, in_features, f_pad)
    out = jax.block_until_ready(out)

    ref = reference_forward(img, kernel_params, in_features, f_pad)
    np.testing.assert_allclose(np.asarray(out), np.asarray(ref),
                               rtol=5e-3, atol=5e-3)

    assert out.shape == (batch, 1)
    print("KERNEL_OK")
</pallas_src>

<mosaic_0001>
module attributes {stable_mosaic.version = 11 : i64} {
  func.func @discriminator_kernel(%arg0: i32, %arg1: memref<8x256xbf16, #tpu.memory_space<vmem>>, %arg2: memref<256x1024xbf16, #tpu.memory_space<vmem>>, %arg3: memref<1x1024xf32, #tpu.memory_space<vmem>>, %arg4: memref<1024x512xbf16, #tpu.memory_space<vmem>>, %arg5: memref<1x512xf32, #tpu.memory_space<vmem>>, %arg6: memref<512x256xbf16, #tpu.memory_space<vmem>>, %arg7: memref<1x256xf32, #tpu.memory_space<vmem>>, %arg8: memref<256x128xbf16, #tpu.memory_space<vmem>>, %arg9: memref<1x128xf32, #tpu.memory_space<vmem>>, %arg10: memref<1x128xf32, #tpu.memory_space<vmem>>, %arg11: memref<1x1xf32, #tpu.memory_space<vmem>>, %arg12: memref<8x1xf32, #tpu.memory_space<vmem>>) attributes {dimension_semantics = [#tpu.dimension_semantics<parallel>], iteration_bounds = array<i64: 1>, scalar_prefetch = 0 : i64, scratch_operands = 0 : i64, tpu.core_type = #tpu.core_type<tc>, window_params = [{transform_indices = @transform_0, window_bounds = array<i64: 8, 256>}, {pipeline_mode = #tpu.pipeline_mode<synchronous>, transform_indices = @transform_1, window_bounds = array<i64: 256, 1024>}, {pipeline_mode = #tpu.pipeline_mode<synchronous>, transform_indices = @transform_2, window_bounds = array<i64: 1, 1024>}, {pipeline_mode = #tpu.pipeline_mode<synchronous>, transform_indices = @transform_3, window_bounds = array<i64: 1024, 512>}, {pipeline_mode = #tpu.pipeline_mode<synchronous>, transform_indices = @transform_4, window_bounds = array<i64: 1, 512>}, {pipeline_mode = #tpu.pipeline_mode<synchronous>, transform_indices = @transform_5, window_bounds = array<i64: 512, 256>}, {pipeline_mode = #tpu.pipeline_mode<synchronous>, transform_indices = @transform_6, window_bounds = array<i64: 1, 256>}, {pipeline_mode = #tpu.pipeline_mode<synchronous>, transform_indices = @transform_7, window_bounds = array<i64: 256, 128>}, {pipeline_mode = #tpu.pipeline_mode<synchronous>, transform_indices = @transform_8, window_bounds = array<i64: 1, 128>}, {pipeline_mode = #tpu.pipeline_mode<synchronous>, transform_indices = @transform_9, window_bounds = array<i64: 1, 128>}, {pipeline_mode = #tpu.pipeline_mode<synchronous>, transform_indices = @transform_10, window_bounds = array<i64: 1, 1>}, {transform_indices = @transform_11, window_bounds = array<i64: 8, 1>}]} {
    %c0 = arith.constant 0 : index
    %c0_0 = arith.constant 0 : index
    %0 = vector.load %arg1[%c0, %c0_0] : memref<8x256xbf16, #tpu.memory_space<vmem>>, vector<8x256xbf16>
    %c0_1 = arith.constant 0 : index
    %c0_2 = arith.constant 0 : index
    %1 = vector.load %arg2[%c0_1, %c0_2] : memref<256x1024xbf16, #tpu.memory_space<vmem>>, vector<256x1024xbf16>
    %cst = arith.constant dense<0.000000e+00> : vector<8x1024xf32>
    %2 = tpu.matmul %0, %1, %cst {dimension_numbers = #tpu.dot_dimension_numbers<[1], [0], [0], [1], [0, 0, 1, 1], [], []>} : vector<8x256xbf16>, vector<256x1024xbf16>, vector<8x1024xf32> -> vector<8x1024xf32>
    %c0_3 = arith.constant 0 : index
    %c0_4 = arith.constant 0 : index
    %3 = vector.load %arg3[%c0_3, %c0_4] : memref<1x1024xf32, #tpu.memory_space<vmem>>, vector<1x1024xf32>
    %4 = vector.broadcast %3 : vector<1x1024xf32> to vector<8x1024xf32>
    %5 = arith.addf %2, %4 : vector<8x1024xf32>
    %cst_5 = arith.constant 0.000000e+00 : f32
    %6 = vector.broadcast %cst_5 : f32 to vector<8x1024xf32>
    %7 = arith.cmpf ogt, %5, %6 : vector<8x1024xf32>
    %cst_6 = arith.constant 2.000000e-01 : f32
    %8 = vector.broadcast %cst_6 : f32 to vector<8x1024xf32>
    %9 = arith.mulf %8, %5 : vector<8x1024xf32>
    %10 = arith.select %7, %5, %9 : vector<8x1024xi1>, vector<8x1024xf32>
    %11 = arith.truncf %10 : vector<8x1024xf32> to vector<8x1024xbf16>
    %c0_7 = arith.constant 0 : index
    %c0_8 = arith.constant 0 : index
    %12 = vector.load %arg4[%c0_7, %c0_8] : memref<1024x512xbf16, #tpu.memory_space<vmem>>, vector<1024x512xbf16>
    %cst_9 = arith.constant dense<0.000000e+00> : vector<8x512xf32>
    %13 = tpu.matmul %11, %12, %cst_9 {dimension_numbers = #tpu.dot_dimension_numbers<[1], [0], [0], [1], [0, 0, 1, 1], [], []>} : vector<8x1024xbf16>, vector<1024x512xbf16>, vector<8x512xf32> -> vector<8x512xf32>
    %c0_10 = arith.constant 0 : index
    %c0_11 = arith.constant 0 : index
    %14 = vector.load %arg5[%c0_10, %c0_11] : memref<1x512xf32, #tpu.memory_space<vmem>>, vector<1x512xf32>
    %15 = vector.broadcast %14 : vector<1x512xf32> to vector<8x512xf32>
    %16 = arith.addf %13, %15 : vector<8x512xf32>
    %cst_12 = arith.constant 0.000000e+00 : f32
    %17 = vector.broadcast %cst_12 : f32 to vector<8x512xf32>
    %18 = arith.cmpf ogt, %16, %17 : vector<8x512xf32>
    %cst_13 = arith.constant 2.000000e-01 : f32
    %19 = vector.broadcast %cst_13 : f32 to vector<8x512xf32>
    %20 = arith.mulf %19, %16 : vector<8x512xf32>
    %21 = arith.select %18, %16, %20 : vector<8x512xi1>, vector<8x512xf32>
    %22 = arith.truncf %21 : vector<8x512xf32> to vector<8x512xbf16>
    %c0_14 = arith.constant 0 : index
    %c0_15 = arith.constant 0 : index
    %23 = vector.load %arg6[%c0_14, %c0_15] : memref<512x256xbf16, #tpu.memory_space<vmem>>, vector<512x256xbf16>
    %cst_16 = arith.constant dense<0.000000e+00> : vector<8x256xf32>
    %24 = tpu.matmul %22, %23, %cst_16 {dimension_numbers = #tpu.dot_dimension_numbers<[1], [0], [0], [1], [0, 0, 1, 1], [], []>} : vector<8x512xbf16>, vector<512x256xbf16>, vector<8x256xf32> -> vector<8x256xf32>
    %c0_17 = arith.constant 0 : index
    %c0_18 = arith.constant 0 : index
    %25 = vector.load %arg7[%c0_17, %c0_18] : memref<1x256xf32, #tpu.memory_space<vmem>>, vector<1x256xf32>
    %26 = vector.broadcast %25 : vector<1x256xf32> to vector<8x256xf32>
    %27 = arith.addf %24, %26 : vector<8x256xf32>
    %cst_19 = arith.constant 0.000000e+00 : f32
    %28 = vector.broadcast %cst_19 : f32 to vector<8x256xf32>
    %29 = arith.cmpf ogt, %27, %28 : vector<8x256xf32>
    %cst_20 = arith.constant 2.000000e-01 : f32
    %30 = vector.broadcast %cst_20 : f32 to vector<8x256xf32>
    %31 = arith.mulf %30, %27 : vector<8x256xf32>
    %32 = arith.select %29, %27, %31 : vector<8x256xi1>, vector<8x256xf32>
    %33 = arith.truncf %32 : vector<8x256xf32> to vector<8x256xbf16>
    %c0_21 = arith.constant 0 : index
    %c0_22 = arith.constant 0 : index
    %34 = vector.load %arg8[%c0_21, %c0_22] : memref<256x128xbf16, #tpu.memory_space<vmem>>, vector<256x128xbf16>
    %cst_23 = arith.constant dense<0.000000e+00> : vector<8x128xf32>
    %35 = tpu.matmul %33, %34, %cst_23 {dimension_numbers = #tpu.dot_dimension_numbers<[1], [0], [0], [1], [0, 0, 1, 1], [], []>} : vector<8x256xbf16>, vector<256x128xbf16>, vector<8x128xf32> -> vector<8x128xf32>
    %c0_24 = arith.constant 0 : index
    %c0_25 = arith.constant 0 : index
    %36 = vector.load %arg9[%c0_24, %c0_25] : memref<1x128xf32, #tpu.memory_space<vmem>>, vector<1x128xf32>
    %37 = vector.broadcast %36 : vector<1x128xf32> to vector<8x128xf32>
    %38 = arith.addf %35, %37 : vector<8x128xf32>
    %cst_26 = arith.constant 0.000000e+00 : f32
    %39 = vector.broadcast %cst_26 : f32 to vector<8x128xf32>
    %40 = arith.cmpf ogt, %38, %39 : vector<8x128xf32>
    %cst_27 = arith.constant 2.000000e-01 : f32
    %41 = vector.broadcast %cst_27 : f32 to vector<8x128xf32>
    %42 = arith.mulf %41, %38 : vector<8x128xf32>
    %43 = arith.select %40, %38, %42 : vector<8x128xi1>, vector<8x128xf32>
    %44 = arith.truncf %43 : vector<8x128xf32> to vector<8x128xbf16>
    %45 = arith.extf %44 : vector<8x128xbf16> to vector<8x128xf32>
    %c0_28 = arith.constant 0 : index
    %c0_29 = arith.constant 0 : index
    %46 = vector.load %arg10[%c0_28, %c0_29] : memref<1x128xf32, #tpu.memory_space<vmem>>, vector<1x128xf32>
    %47 = vector.broadcast %46 : vector<1x128xf32> to vector<8x128xf32>
    %48 = arith.mulf %45, %47 : vector<8x128xf32>
    %cst_30 = arith.constant dense<0.000000e+00> : vector<8xf32>
    %49 = vector.multi_reduction <add>, %48, %cst_30 [1] : vector<8x128xf32> to vector<8xf32>
    %50 = vector.shape_cast %49 : vector<8xf32> to vector<8x1xf32>
    %c0_31 = arith.constant 0 : index
    %c0_32 = arith.constant 0 : index
    %51 = vector.load %arg11[%c0_31, %c0_32] : memref<1x1xf32, #tpu.memory_space<vmem>>, vector<1x1xf32>
    %52 = vector.broadcast %51 : vector<1x1xf32> to vector<8x1xf32>
    %53 = arith.addf %50, %52 : vector<8x1xf32>
    %cst_33 = arith.constant 0.000000e+00 : f32
    %54 = vector.broadcast %cst_33 : f32 to vector<8x1xf32>
    %55 = arith.subf %54, %53 : vector<8x1xf32>
    %56 = math.exp %55 : vector<8x1xf32>
    %cst_34 = arith.constant 1.000000e+00 : f32
    %57 = vector.broadcast %cst_34 : f32 to vector<8x1xf32>
    %58 = arith.addf %57, %56 : vector<8x1xf32>
    %59 = tpu.reciprocal %58 {approx = true} : vector<8x1xf32> -> vector<8x1xf32>
    %c0_35 = arith.constant 0 : index
    %c0_36 = arith.constant 0 : index
    %60 = vector.load %arg12[%c0_35, %c0_36] : memref<8x1xf32, #tpu.memory_space<vmem>>, vector<8x1xf32>
    tpu.vector_store %arg12[%c0_35, %c0_36], %59 {strides = array<i32>} : memref<8x1xf32, #tpu.memory_space<vmem>>, vector<8x1xf32>,
    return
  }
  func.func @transform_0(%arg0: i32) -> (i32, i32) {
    %c0_i32 = arith.constant 0 : i32
    %c0_i32_0 = arith.constant 0 : i32
    return %arg0, %c0_i32 : i32, i32
  }
  func.func @transform_1(%arg0: i32) -> (i32, i32) {
    %c0_i32 = arith.constant 0 : i32
    %c0_i32_0 = arith.constant 0 : i32
    %c0_i32_1 = arith.constant 0 : i32
    return %c0_i32, %c0_i32_0 : i32, i32
  }
  func.func @transform_2(%arg0: i32) -> (i32, i32) {
    %c0_i32 = arith.constant 0 : i32
    %c0_i32_0 = arith.constant 0 : i32
    %c0_i32_1 = arith.constant 0 : i32
    return %c0_i32, %c0_i32_0 : i32, i32
  }
  func.func @transform_3(%arg0: i32) -> (i32, i32) {
    %c0_i32 = arith.constant 0 : i32
    %c0_i32_0 = arith.constant 0 : i32
    %c0_i32_1 = arith.constant 0 : i32
    return %c0_i32, %c0_i32_0 : i32, i32
  }
  func.func @transform_4(%arg0: i32) -> (i32, i32) {
    %c0_i32 = arith.constant 0 : i32
    %c0_i32_0 = arith.constant 0 : i32
    %c0_i32_1 = arith.constant 0 : i32
    return %c0_i32, %c0_i32_0 : i32, i32
  }
  func.func @transform_5(%arg0: i32) -> (i32, i32) {
    %c0_i32 = arith.constant 0 : i32
    %c0_i32_0 = arith.constant 0 : i32
    %c0_i32_1 = arith.constant 0 : i32
    return %c0_i32, %c0_i32_0 : i32, i32
  }
  func.func @transform_6(%arg0: i32) -> (i32, i32) {
    %c0_i32 = arith.constant 0 : i32
    %c0_i32_0 = arith.constant 0 : i32
    %c0_i32_1 = arith.constant 0 : i32
    return %c0_i32, %c0_i32_0 : i32, i32
  }
  func.func @transform_7(%arg0: i32) -> (i32, i32) {
    %c0_i32 = arith.constant 0 : i32
    %c0_i32_0 = arith.constant 0 : i32
    %c0_i32_1 = arith.constant 0 : i32
    return %c0_i32, %c0_i32_0 : i32, i32
  }
  func.func @transform_8(%arg0: i32) -> (i32, i32) {
    %c0_i32 = arith.constant 0 : i32
    %c0_i32_0 = arith.constant 0 : i32
    %c0_i32_1 = arith.constant 0 : i32
    return %c0_i32, %c0_i32_0 : i32, i32
  }
  func.func @transform_9(%arg0: i32) -> (i32, i32) {
    %c0_i32 = arith.constant 0 : i32
    %c0_i32_0 = arith.constant 0 : i32
    %c0_i32_1 = arith.constant 0 : i32
    return %c0_i32, %c0_i32_0 : i32, i32
  }
  func.func @transform_10(%arg0: i32) -> (i32, i32) {
    %c0_i32 = arith.constant 0 : i32
    %c0_i32_0 = arith.constant 0 : i32
    %c0_i32_1 = arith.constant 0 : i32
    return %c0_i32, %c0_i32_0 : i32, i32
  }
  func.func @transform_11(%arg0: i32) -> (i32, i32) {
    %c0_i32 = arith.constant 0 : i32
    %c0_i32_0 = arith.constant 0 : i32
    return %arg0, %c0_i32 : i32, i32
  }
}

</mosaic_0001>

<bundles_post_ra>
// kernel: tpu_custom_call.1
= control target key start
LH: loop header
LB: loop body
LE: loop exit
PB: predicated region body
PF: predicated region fallthrough
CT: control target
= control target key end

     0   :  { %s5112_s0 = inlined_call_operand.hbm [shape: bf16[8,256], index: 0, kind: input, shape index: {}]   ;;  %s5113_s1 = inlined_call_operand.hbm [shape: bf16[256,1024], index: 1, kind: input, shape index: {}]   ;;  %s5114_s2 = inlined_call_operand.vmem [shape: f32[1,1024], index: 2, kind: input, shape index: {}]   ;;  %s5115_s3 = inlined_call_operand.hbm [shape: bf16[1024,512], index: 3, kind: input, shape index: {}]   ;;  %s5116_s4 = inlined_call_operand.vmem [shape: f32[1,512], index: 4, kind: input, shape index: {}]   ;;  %s5117_s5 = inlined_call_operand.hbm [shape: bf16[512,256], index: 5, kind: input, shape index: {}]   ;;  %s5118_s6 = inlined_call_operand.vmem [shape: f32[1,256], index: 6, kind: input, shape index: {}]   ;;  %s5119_s7 = inlined_call_operand.hbm [shape: bf16[256,128], index: 7, kind: input, shape index: {}]   ;;  %s5120_s8 = inlined_call_operand.vmem [shape: f32[1,128], index: 8, kind: input, shape index: {}]   ;;  %s5121_s9 = inlined_call_operand.vmem [shape: f32[1,128], index: 9, kind: input, shape index: {}]   ;;  %s5122_s10 = inlined_call_operand.<no memory space> [shape: f32[1,1], index: 10, kind: input, shape index: {}]   ;;  %s5123_s11 = inlined_call_operand.vmem [shape: f32[8,1], index: 11, kind: output, shape index: {}]  }
   0x1   :  { %v16_v0 = vstv %s5122_s10 }
   0x2   :  { %17 = vst [vmem:[#allocation2] sm:$0x1] %v16_v0 }
   0x3   :  { %18 = vsyncpa [#allocation4], 0 }
   0x4   :  { %19 = vsyncpa [#allocation6], 0 }
   0x5   :  { %20 = vsyncpa [#allocation9], 0  ;;  %s4877_s19 = smov [#allocation5]   ;;  %s4761_s23 = scalar_lea.hbm %s5113_s1, 16384 }
   0x6   :  { %s36_s20 = sshll.u32 %s4877_s19, 4  ;;  %p4762_p0 = scmp.ne.s32.totalorder %s5113_s1, %s4761_s23  ;;  %s37_s20 = int_to_ptr.vmem [resolvable:$true] %s36_s20 }
   0x7   :  { %p4765_p1 = scmp.lt.u32.totalorder %s4761_s23, %s5113_s1 }
   0x9   :  { %p4767_p2 = pnand %p4765_p1, %p4762_p0 }
   0xb   :  { %4770 = shalt.err (!%p4767_p2)
}
   0xc   :  { %s4771_s10 = scalar_lea.vmem %s37_s20, 16384  ;;  %p4776_p4 = scmp.lt.s32.totalorder %s37_s20, %s37_s20 }
   0xd   :  { %p4772_p3 = scmp.ne.s32.totalorder %s37_s20, %s4771_s10  ;;  %p4777_p5 = scmp.lt.s32.totalorder %s4771_s10, %s4771_s10 }
   0xf   :  { %p4778_p6 = por %p4777_p5, %p4776_p4 }
  0x11   :  { %p4779_p7 = pnand %p4778_p6, %p4772_p3 }
  0x13   :  { %4782 = shalt.err (!%p4779_p7)
}
  0x14   :  { %s4878_s28 = smov 512   ;;  %s4879_s29 = smov 32  }
  0x15   :  { %42 = dma.hbm_to_vmem [thread:$0]  %s5113_s1, 16384, %s37_s20, [#allocation6], %s4878_s28, %s4878_s28, %s4879_s29  }
  0x16   :  { %s4880_s13 = smov [#allocation8]   ;;  %s4783_s17 = scalar_lea.hbm %s5117_s5, 8192 }
  0x17   :  { %s64_s14 = sshll.u32 %s4880_s13, 4  ;;  %p4784_p8 = scmp.ne.s32.totalorder %s5117_s5, %s4783_s17  ;;  %s65_s14 = int_to_ptr.vmem [resolvable:$true] %s64_s14 }
  0x18   :  { %p4787_p9 = scmp.lt.u32.totalorder %s4783_s17, %s5117_s5 }
  0x1a   :  { %p4789_p10 = pnand %p4787_p9, %p4784_p8 }
  0x1c   :  { %4792 = shalt.err (!%p4789_p10)
}
  0x1d   :  { %s4793_s23 = scalar_lea.vmem %s65_s14, 8192  ;;  %p4798_p12 = scmp.lt.s32.totalorder %s65_s14, %s65_s14 }
  0x1e   :  { %p4794_p11 = scmp.ne.s32.totalorder %s65_s14, %s4793_s23  ;;  %p4799_p13 = scmp.lt.s32.totalorder %s4793_s23, %s4793_s23 }
  0x20   :  { %p4800_p0 = por %p4799_p13, %p4798_p12 }
  0x22   :  { %p4801_p1 = pnand %p4800_p0, %p4794_p11 }
  0x24   :  { %4804 = shalt.err (!%p4801_p1)
}
  0x25   :  { %s4881_s1 = smov 128   ;;  %s4882_s20 = smov 8  }
  0x26   :  { %70 = dma.hbm_to_vmem [thread:$0]  %s5117_s5, 8192, %s65_s14, [#allocation9], %s4881_s1, %s4881_s1, %s4882_s20  }
  0x27   :  { %s4883_s26 = smov [#allocation3]   ;;  %s4884_s10 = smov [#allocation7]  }
  0x28   :  { %s27_s27 = sshll.u32 %s4883_s26, 4  ;;  %s50_s28 = sshll.u32 %s4884_s10, 4  ;;  %s28_s27 = int_to_ptr.vmem [resolvable:$true] %s27_s27  ;;  %s4977_s28 = int_to_ptr.vmem [resolvable:$true] %s50_s28 }
  0x29   :  { %s4805_s12 = scalar_lea.hbm %s5112_s0, 128 }
  0x2a   :  { %p4806_p2 = scmp.ne.s32.totalorder %s5112_s0, %s4805_s12  ;;  %p4809_p3 = scmp.lt.u32.totalorder %s4805_s12, %s5112_s0 }
  0x2c   :  { %p4811_p4 = pnand %p4809_p3, %p4806_p2 }
  0x2e   :  { %4814 = shalt.err (!%p4811_p4)
}
  0x2f   :  { %s4815_s5 = scalar_lea.vmem %s28_s27, 128  ;;  %p4820_p6 = scmp.lt.s32.totalorder %s28_s27, %s28_s27 }
  0x30   :  { %p4816_p5 = scmp.ne.s32.totalorder %s28_s27, %s4815_s5  ;;  %p4821_p7 = scmp.lt.s32.totalorder %s4815_s5, %s4815_s5 }
  0x32   :  { %p4822_p8 = por %p4821_p7, %p4820_p6 }
  0x34   :  { %p4823_p9 = pnand %p4822_p8, %p4816_p5 }
  0x36   :  { %4826 = shalt.err (!%p4823_p9)
}
  0x37   :  { %30 = dma.hbm_to_vmem [thread:$0]  %s5112_s0, 128, %s28_s27, [#allocation4]  }
  0x38   :  { %s4827_s22 = scalar_lea.hbm %s5115_s3, 32768 }
  0x39   :  { %p4828_p10 = scmp.ne.s32.totalorder %s5115_s3, %s4827_s22  ;;  %p4831_p11 = scmp.lt.u32.totalorder %s4827_s22, %s5115_s3 }
  0x3b   :  { %p4833_p12 = pnand %p4831_p11, %p4828_p10 }
  0x3d   :  { %4836 = shalt.err (!%p4833_p12)
}
  0x3e   :  { %s4837_s25 = scalar_lea.vmem %s4977_s28, 32768  ;;  %p4842_p0 = scmp.lt.s32.totalorder %s4977_s28, %s4977_s28 }
  0x3f   :  { %p4838_p13 = scmp.ne.s32.totalorder %s4977_s28, %s4837_s25  ;;  %p4843_p1 = scmp.lt.s32.totalorder %s4837_s25, %s4837_s25 }
  0x41   :  { %p4844_p2 = por %p4843_p1, %p4842_p0 }
  0x43   :  { %p4845_p3 = pnand %p4844_p2, %p4838_p13 }
  0x45   :  { %4848 = shalt.err (!%p4845_p3)
}
  0x46   :  { %s4885_s0 = smov 256   ;;  %s4886_s26 = smov 16  }
  0x47   :  { %56 = dma.hbm_to_vmem [thread:$0]  %s5115_s3, 32768, %s4977_s28, [#allocation6], %s4885_s0, %s4885_s0, %s4886_s26  }
  0x48   :  { %s4887_s29 = smov [#allocation10]   ;;  %s4849_s15 = scalar_lea.hbm %s5119_s7, 2048 }
  0x49   :  { %s78_s30 = sshll.u32 %s4887_s29, 4  ;;  %p4850_p4 = scmp.ne.s32.totalorder %s5119_s7, %s4849_s15  ;;  %s79_s30 = int_to_ptr.vmem [resolvable:$true] %s78_s30 }
  0x4a   :  { %p4853_p5 = scmp.lt.u32.totalorder %s4849_s15, %s5119_s7 }
  0x4c   :  { %p4855_p6 = pnand %p4853_p5, %p4850_p4 }
  0x4e   :  { %4858 = shalt.err (!%p4855_p6)
}
  0x4f   :  { %s4859_s18 = scalar_lea.vmem %s79_s30, 2048  ;;  %p4864_p8 = scmp.lt.s32.totalorder %s79_s30, %s79_s30 }
  0x50   :  { %p4860_p7 = scmp.ne.s32.totalorder %s79_s30, %s4859_s18  ;;  %p4865_p9 = scmp.lt.s32.totalorder %s4859_s18, %s4859_s18 }
  0x52   :  { %p4866_p10 = por %p4865_p9, %p4864_p8 }
  0x54   :  { %p4867_p11 = pnand %p4866_p10, %p4860_p7 }
  0x56   :  { %4870 = shalt.err (!%p4867_p11)
}
  0x57   :  { %s4888_s3 = smov 64   ;;  %s4889_s28 = smov 4  }
  0x58   :  { %84 = dma.hbm_to_vmem [thread:$0]  %s5119_s7, 2048, %s79_s30, [#allocation9], %s4888_s3, %s4888_s3, %s4889_s28  }
  0x59   :  { %4871 = dma.done.wait [#allocation4], 128  }
  0x5a   :  { %4872 = vsyncadd [#allocation4], 4294967168 }
  0x5b   :  { %4873 = dma.done.wait [#allocation6], 49152  }
  0x5c   :  { %4874 = vsyncadd [#allocation6], 4294918144 }
  0x5d   :  { %4875 = dma.done.wait [#allocation9], 10240  }
  0x5e   :  { %4876 = vsyncadd [#allocation9], 4294957056  ;;  %v108_v1 = vld [vmem:[#allocation5] sm:$0xff]  ;;  %v5020_v18 = vld [vmem:[#allocation3] sm:$0xff]  ;;  %vm3712_vm15 = vcmask 7168  }
  0x5f   :  { %v112_v2 = vld [vmem:[#allocation5 + $0x20] sm:$0xff]  ;;  %v5024_v19 = vcombine.high %v5020_v18, %v5020_v18  ;;  %v110_v32 = vld [vmem:[#allocation5 + $0x10] sm:$0xff] }
  0x60   :  { %v116_v3 = vld [vmem:[#allocation5 + $0x40] sm:$0xff]  ;;  %v3724_v4 = vcombine.high %v108_v1, %v112_v2  ;;  %v3723_v5 = vcombine.low %v108_v1, %v112_v2  ;;  %v114_v33 = vld [vmem:[#allocation5 + $0x30] sm:$0xff] }
  0x61   :  { %v120_v6 = vld [vmem:[#allocation5 + $0x60] sm:$0xff]  ;;  %957 = vmatprep.mubr.bf16.mxu1 %v5024_v19  ;;  %1039 = vmatprep.mubr.bf16.mxu0 %v5024_v19  ;;  %v118_v34 = vld [vmem:[#allocation5 + $0x50] sm:$0xff]  ;;  %v3728_v36 = vcombine.high %v110_v32, %v114_v33  ;;  %v3727_v37 = vcombine.low %v110_v32, %v114_v33 }
  0x62   :  { %v3732_v7 = vcombine.high %v116_v3, %v120_v6  ;;  %v124_v8 = vld [vmem:[#allocation5 + $0x80] sm:$0xff]  ;;  %925 = vmatprep.subr.bf16.mxu1 %v3724_v4  ;;  %v3731_v10 = vcombine.low %v116_v3, %v120_v6  ;;  %v122_v35 = vld [vmem:[#allocation5 + $0x70] sm:$0xff] }
  0x63   :  { %v128_v9 = vld [vmem:[#allocation5 + $0xa0] sm:$0xff]  ;;  %926 = vmatpush1.bf16.msra.mxu1 %v3723_v5  ;;  %v3736_v38 = vcombine.high %v118_v34, %v122_v35  ;;  %v126_v40 = vld [vmem:[#allocation5 + $0x90] sm:$0xff]  ;;  %1007 = vmatprep.subr.bf16.mxu0 %v3728_v36  ;;  %v3735_v45 = vcombine.low %v118_v34, %v122_v35 }
  0x64   :  { %927 = vmatprep.subr.bf16.mxu1 %v3732_v7  ;;  %v3740_v11 = vcombine.high %v124_v8, %v128_v9  ;;  %v132_v12 = vld [vmem:[#allocation5 + $0xc0] sm:$0xff]  ;;  %v3739_v14 = vcombine.low %v124_v8, %v128_v9  ;;  %v130_v41 = vld [vmem:[#allocation5 + $0xb0] sm:$0xff]  ;;  %1008 = vmatpush1.bf16.msra.mxu0 %v3727_v37 }
  0x65   :  { %v136_v13 = vld [vmem:[#allocation5 + $0xe0] sm:$0xff]  ;;  %1009 = vmatprep.subr.bf16.mxu0 %v3736_v38  ;;  %v3744_v46 = vcombine.high %v126_v40, %v130_v41  ;;  %v134_v48 = vld [vmem:[#allocation5 + $0xd0] sm:$0xff]  ;;  %v3743_v53 = vcombine.low %v126_v40, %v130_v41 }
  0x66   :  { %v3748_v15 = vcombine.high %v132_v12, %v136_v13  ;;  %v140_v16 = vld [vmem:[#allocation5 + $0x100] sm:$0xff]  ;;  %v3747_v20 = vcombine.low %v132_v12, %v136_v13  ;;  %v138_v49 = vld [vmem:[#allocation5 + $0xf0] sm:$0xff] }
  0x67   :  { %928 = vmatpush1.bf16.msra.mxu1 %v3731_v10  ;;  %v144_v17 = vld [vmem:[#allocation5 + $0x120] sm:$0xff]  ;;  %v3752_v54 = vcombine.high %v134_v48, %v138_v49  ;;  %v142_v56 = vld [vmem:[#allocation5 + $0x110] sm:$0xff]  ;;  %v3751_v61 = vcombine.low %v134_v48, %v138_v49 }
  0x68   :  { %929 = vmatprep.subr.bf16.mxu1 %v3740_v11  ;;  %v3756_v21 = vcombine.high %v140_v16, %v144_v17  ;;  %v148_v22 = vld [vmem:[#allocation5 + $0x140] sm:$0xff]  ;;  %v3755_v24 = vcombine.low %v140_v16, %v144_v17  ;;  %1010 = vmatpush1.bf16.msra.mxu0 %v3735_v45  ;;  %v146_v57 = vld [vmem:[#allocation5 + $0x130] sm:$0xff] }
  0x69   :  { %v152_v23 = vld [vmem:[#allocation5 + $0x160] sm:$0xff]  ;;  %1011 = vmatprep.subr.bf16.mxu0 %v3744_v46  ;;  %v3760_v62 = vcombine.high %v142_v56, %v146_v57  ;;  %v150_v0 = vld [vmem:[#allocation5 + $0x150] sm:$0xff]  ;;  %v3759_v5 = vcombine.low %v142_v56, %v146_v57  ;;  %v5030_v56 = vcombine.low %v5020_v18, %v5020_v18  ;;  %v133_v18 = vld [vmem:[#allocation5 + $0xc8] sm:$0xff] }
  0x6a   :  { %v3764_v25 = vcombine.high %v148_v22, %v152_v23  ;;  %v156_v26 = vld [vmem:[#allocation5 + $0x180] sm:$0xff]  ;;  %v3763_v28 = vcombine.low %v148_v22, %v152_v23  ;;  %v154_v1 = vld [vmem:[#allocation5 + $0x170] sm:$0xff] }
  0x6b   :  { %930 = vmatpush1.bf16.msra.mxu1 %v3739_v14  ;;  %v160_v27 = vld [vmem:[#allocation5 + $0x1a0] sm:$0xff]  ;;  %v3768_v6 = vcombine.high %v150_v0, %v154_v1  ;;  %v158_v10 = vld [vmem:[#allocation5 + $0x190] sm:$0xff]  ;;  %v3767_v13 = vcombine.low %v150_v0, %v154_v1 }
  0x6c   :  { %931 = vmatprep.subr.bf16.mxu1 %v3748_v15  ;;  %v3772_v29 = vcombine.high %v156_v26, %v160_v27  ;;  %v164_v30 = vld [vmem:[#allocation5 + $0x1c0] sm:$0xff]  ;;  %v3771_v39 = vcombine.low %v156_v26, %v160_v27  ;;  %1012 = vmatpush1.bf16.msra.mxu0 %v3743_v53  ;;  %v162_v11 = vld [vmem:[#allocation5 + $0x1b0] sm:$0xff] }
  0x6d   :  { %v168_v31 = vld [vmem:[#allocation5 + $0x1e0] sm:$0xff]  ;;  %1013 = vmatprep.subr.bf16.mxu0 %v3752_v54  ;;  %v3776_v14 = vcombine.high %v158_v10, %v162_v11  ;;  %v3775_v23 = vcombine.low %v158_v10, %v162_v11  ;;  %v182_v36 = vld [vmem:[#allocation5 + $0x250] sm:$0xff]  ;;  %v141_v10 = vld [vmem:[#allocation5 + $0x108] sm:$0xff] }
  0x6e   :  { %v3780_v42 = vcombine.high %v164_v30, %v168_v31  ;;  %v172_v43 = vld [vmem:[#allocation5 + $0x200] sm:$0xff]  ;;  %v3779_v47 = vcombine.low %v164_v30, %v168_v31  ;;  %v186_v37 = vld [vmem:[#allocation5 + $0x270] sm:$0xff] }
  0x6f   :  { %932 = vmatpush1.bf16.msra.mxu1 %v3747_v20  ;;  %v176_v44 = vld [vmem:[#allocation5 + $0x220] sm:$0xff]  ;;  %v166_v20 = vld [vmem:[#allocation5 + $0x1d0] sm:$0xff]  ;;  %v3800_v40 = vcombine.high %v182_v36, %v186_v37 }
  0x70   :  { %933 = vmatprep.subr.bf16.mxu1 %v3756_v21  ;;  %v3788_v50 = vcombine.high %v172_v43, %v176_v44  ;;  %v180_v51 = vld [vmem:[#allocation5 + $0x240] sm:$0xff]  ;;  %v3787_v55 = vcombine.low %v172_v43, %v176_v44  ;;  %1014 = vmatpush1.bf16.msra.mxu0 %v3751_v61  ;;  %v170_v21 = vld [vmem:[#allocation5 + $0x1f0] sm:$0xff]  ;;  %v113_v43 = vld [vmem:[#allocation5 + $0x28] sm:$0xff] }
  0x71   :  { %v184_v52 = vld [vmem:[#allocation5 + $0x260] sm:$0xff]  ;;  %1015 = vmatprep.subr.bf16.mxu0 %v3760_v62  ;;  %v3783_v31 = vcombine.low %v166_v20, %v170_v21  ;;  %v190_v44 = vld [vmem:[#allocation5 + $0x290] sm:$0xff] }
  0x72   :  { %v3796_v58 = vcombine.high %v180_v51, %v184_v52  ;;  %v188_v59 = vld [vmem:[#allocation5 + $0x280] sm:$0xff]  ;;  %v3795_v63 = vcombine.low %v180_v51, %v184_v52  ;;  %v194_v45 = vld [vmem:[#allocation5 + $0x2b0] sm:$0xff]  ;;  %v121_v51 = vld [vmem:[#allocation5 + $0x68] sm:$0xff] }
  0x73   :  { %934 = vmatpush1.bf16.msra.mxu1 %v3755_v24  ;;  %v192_v60 = vld [vmem:[#allocation5 + $0x2a0] sm:$0xff]  ;;  %v3784_v24 = vcombine.high %v166_v20, %v170_v21  ;;  %v3808_v48 = vcombine.high %v190_v44, %v194_v45  ;;  %v198_v52 = vld [vmem:[#allocation5 + $0x2d0] sm:$0xff]  ;;  %v149_v20 = vld [vmem:[#allocation5 + $0x148] sm:$0xff] }
  0x74   :  { %935 = vmatprep.subr.bf16.mxu1 %v3764_v25  ;;  %v3804_v2 = vcombine.high %v188_v59, %v192_v60  ;;  %v196_v3 = vld [vmem:[#allocation5 + $0x2c0] sm:$0xff]  ;;  %v3803_v7 = vcombine.low %v188_v59, %v192_v60  ;;  %1016 = vmatpush1.bf16.msra.mxu0 %v3759_v5  ;;  %v202_v53 = vld [vmem:[#allocation5 + $0x2f0] sm:$0xff]  ;;  %v125_v59 = vld [vmem:[#allocation5 + $0x88] sm:$0xff] }
  0x75   :  { %v200_v4 = vld [vmem:[#allocation5 + $0x2e0] sm:$0xff]  ;;  %1017 = vmatprep.subr.bf16.mxu0 %v3768_v6  ;;  %v3816_v57 = vcombine.high %v198_v52, %v202_v53  ;;  %v206_v60 = vld [vmem:[#allocation5 + $0x310] sm:$0xff]  ;;  %v3815_v0 = vcombine.low %v198_v52, %v202_v53  ;;  %v137_v6 = vld [vmem:[#allocation5 + $0xe8] sm:$0xff] }
  0x76   :  { %v204_v8 = vld [vmem:[#allocation5 + $0x300] sm:$0xff]  ;;  %v3812_v12 = vcombine.high %v196_v3, %v200_v4  ;;  %v3811_v15 = vcombine.low %v196_v3, %v200_v4  ;;  %v210_v61 = vld [vmem:[#allocation5 + $0x330] sm:$0xff]  ;;  %v189_v52 = vld [vmem:[#allocation5 + $0x288] sm:$0xff] }
  0x77   :  { %936 = vmatpush1.bf16.msra.mxu1 %v3763_v28  ;;  %v208_v9 = vld [vmem:[#allocation5 + $0x320] sm:$0xff]  ;;  %v174_v28 = vld [vmem:[#allocation5 + $0x210] sm:$0xff]  ;;  %v3824_v1 = vcombine.high %v206_v60, %v210_v61  ;;  %v193_v53 = vld [vmem:[#allocation5 + $0x2a8] sm:$0xff] }
  0x78   :  { %937 = vmatprep.subr.bf16.mxu1 %v3772_v29  ;;  %v212_v16 = vld [vmem:[#allocation5 + $0x340] sm:$0xff]  ;;  %v3820_v22 = vcombine.high %v204_v8, %v208_v9  ;;  %1018 = vmatpush1.bf16.msra.mxu0 %v3767_v13  ;;  %v3819_v25 = vcombine.low %v204_v8, %v208_v9  ;;  %v178_v29 = vld [vmem:[#allocation5 + $0x230] sm:$0xff]  ;;  %v3750_v13 = vcombine.high %v133_v18, %v137_v6 }
  0x79   :  { %v216_v17 = vld [vmem:[#allocation5 + $0x360] sm:$0xff]  ;;  %1019 = vmatprep.subr.bf16.mxu0 %v3776_v14  ;;  %v3792_v32 = vcombine.high %v174_v28, %v178_v29  ;;  %v214_v3 = vld [vmem:[#allocation5 + $0x350] sm:$0xff]  ;;  %v145_v14 = vld [vmem:[#allocation5 + $0x128] sm:$0xff] }
  0x7a   :  { %v220_v26 = vld [vmem:[#allocation5 + $0x380] sm:$0xff]  ;;  %v3828_v30 = vcombine.high %v212_v16, %v216_v17  ;;  %v3827_v33 = vcombine.low %v212_v16, %v216_v17  ;;  %v218_v4 = vld [vmem:[#allocation5 + $0x370] sm:$0xff]  ;;  %v3749_v17 = vcombine.low %v133_v18, %v137_v6  ;;  %v213_v6 = vld [vmem:[#allocation5 + $0x348] sm:$0xff] }
  0x7b   :  { %938 = vmatpush1.bf16.msra.mxu1 %v3771_v39  ;;  %v224_v27 = vld [vmem:[#allocation5 + $0x3a0] sm:$0xff]  ;;  %v3791_v39 = vcombine.low %v174_v28, %v178_v29  ;;  %v3832_v8 = vcombine.high %v214_v3, %v218_v4  ;;  %v222_v11 = vld [vmem:[#allocation5 + $0x390] sm:$0xff]  ;;  %v157_v28 = vld [vmem:[#allocation5 + $0x188] sm:$0xff] }
  0x7c   :  { %939 = vmatprep.subr.bf16.mxu1 %v3780_v42  ;;  %1020 = vmatpush1.bf16.msra.mxu0 %v3775_v23  ;;  %v228_v34 = vld [vmem:[#allocation5 + $0x3c0] sm:$0xff]  ;;  %v3836_v38 = vcombine.high %v220_v26, %v224_v27  ;;  %v3835_v41 = vcombine.low %v220_v26, %v224_v27  ;;  %v109_v42 = vld [vmem:[#allocation5 + $0x8] sm:$0xff]  ;;  %v230_v21 = vld [vmem:[#allocation5 + $0x3d0] sm:$0xff]  ;;  %v3758_v23 = vcombine.high %v141_v10, %v145_v14 }
  0x7d   :  { %1021 = vmatprep.subr.bf16.mxu0 %v3784_v24  ;;  %v232_v35 = vld [vmem:[#allocation5 + $0x3e0] sm:$0xff]  ;;  %v3726_v54 = vcombine.high %v109_v42, %v113_v43  ;;  %v153_v24 = vld [vmem:[#allocation5 + $0x168] sm:$0xff]  ;;  %v3757_v27 = vcombine.low %v141_v10, %v145_v14 }
  0x7e   :  { %v3844_v46 = vcombine.high %v228_v34, %v232_v35  ;;  %v3843_v49 = vcombine.low %v228_v34, %v232_v35  ;;  %v161_v29 = vld [vmem:[#allocation5 + $0x1a8] sm:$0xff]  ;;  %v4291_v18 = vld [vmem:[#allocation7 + $0xa0] ss:$16 sps:$4 sm:$0xff]   ;;  %v4305_v10 = vld [vmem:[#allocation7 + $0xe4] ss:$16 sps:$4 sm:$0xff]  }
  0x7f   :  { %940 = vmatpush1.bf16.msra.mxu1 %v3779_v47  ;;  %v3799_v47 = vcombine.low %v182_v36, %v186_v37  ;;  %v165_v34 = vld [vmem:[#allocation5 + $0x1c8] sm:$0xff]  ;;  %v4261_v36 = vld [vmem:[#allocation7] ss:$16 sps:$4 sm:$0xff]   ;;  %v3774_v37 = vcombine.high %v157_v28, %v161_v29 }
  0x80   :  { %941 = vmatprep.subr.bf16.mxu1 %v3788_v50  ;;  %1022 = vmatpush1.bf16.msra.mxu0 %v3783_v31  ;;  %v117_v50 = vld [vmem:[#allocation5 + $0x48] sm:$0xff]  ;;  %v4263_v31 = vld [vmem:[#allocation7 + $0x4] ss:$16 sps:$4 sm:$0xff]   ;;  %v4303_v14 = vld [vmem:[#allocation7 + $0xe0] ss:$16 sps:$4 sm:$0xff]  }
  0x81   :  { %1023 = vmatprep.subr.bf16.mxu0 %v3792_v32  ;;  %v3734_v62 = vcombine.high %v117_v50, %v121_v51  ;;  %v169_v35 = vld [vmem:[#allocation5 + $0x1e8] sm:$0xff] }
  0x83   :  { %942 = vmatpush1.bf16.msra.mxu1 %v3787_v55  ;;  %v3807_v55 = vcombine.low %v190_v44, %v194_v45  ;;  %v4275_v44 = vld [vmem:[#allocation7 + $0x44] ss:$16 sps:$4 sm:$0xff]   ;;  %v3781_v45 = vcombine.low %v165_v34, %v169_v35 }
  0x84   :  { %943 = vmatprep.subr.bf16.mxu1 %v3796_v58  ;;  %1024 = vmatpush1.bf16.msra.mxu0 %v3791_v39  ;;  %v3725_v58 = vcombine.low %v109_v42, %v113_v43  ;;  %v3773_v39 = vcombine.low %v157_v28, %v161_v29  ;;  %v4267_v42 = vld [vmem:[#allocation7 + $0x20] ss:$16 sps:$4 sm:$0xff]   ;;  %v3782_v43 = vcombine.high %v165_v34, %v169_v35 }
  0x85   :  { %1025 = vmatprep.subr.bf16.mxu0 %v3800_v40  ;;  %v173_v40 = vld [vmem:[#allocation5 + $0x208] sm:$0xff]  ;;  %v4315_v28 = vld [vmem:[#allocation7 + $0x120] ss:$16 sps:$4 sm:$0xff]  }
  0x86   :  { %v4321_v34 = vld [vmem:[#allocation7 + $0x140] ss:$16 sps:$4 sm:$0xff]  }
  0x87   :  { %944 = vmatpush1.bf16.msra.mxu1 %v3795_v63  ;;  %v129_v63 = vld [vmem:[#allocation5 + $0xa8] sm:$0xff] }
  0x88   :  { %945 = vmatprep.subr.bf16.mxu1 %v3804_v2  ;;  %1026 = vmatpush1.bf16.msra.mxu0 %v3799_v47  ;;  %v3733_v2 = vcombine.low %v117_v50, %v121_v51  ;;  %v3742_v5 = vcombine.high %v125_v59, %v129_v63  ;;  %v3741_v9 = vcombine.low %v125_v59, %v129_v63  ;;  %v185_v47 = vld [vmem:[#allocation5 + $0x268] sm:$0xff]  ;;  %v4281_v50 = vld [vmem:[#allocation7 + $0x64] ss:$16 sps:$4 sm:$0xff]  }
  0x89   :  { %1027 = vmatprep.subr.bf16.mxu0 %v3808_v48  ;;  %v4273_v48 = vld [vmem:[#allocation7 + $0x40] ss:$16 sps:$4 sm:$0xff]   ;;  %v197_v59 = vld [vmem:[#allocation5 + $0x2c8] sm:$0xff]  ;;  %v4293_v63 = vld [vmem:[#allocation7 + $0xa4] ss:$16 sps:$4 sm:$0xff]  }
  0x8b   :  { %946 = vmatpush1.bf16.msra.mxu1 %v3803_v7  ;;  %v3823_v7 = vcombine.low %v206_v60, %v210_v61  ;;  %v201_v60 = vld [vmem:[#allocation5 + $0x2e8] sm:$0xff]  ;;  %v4285_v61 = vld [vmem:[#allocation7 + $0x80] ss:$16 sps:$4 sm:$0xff]  }
  0x8c   :  { %947 = vmatprep.subr.bf16.mxu1 %v3812_v12  ;;  %1028 = vmatpush1.bf16.msra.mxu0 %v3807_v55  ;;  %v226_v12 = vld [vmem:[#allocation5 + $0x3b0] sm:$0xff] }
  0x8d   :  { %1029 = vmatprep.subr.bf16.mxu0 %v3816_v57  ;;  %v3840_v16 = vcombine.high %v222_v11, %v226_v12  ;;  %v4287_v57 = vld [vmem:[#allocation7 + $0x84] ss:$16 sps:$4 sm:$0xff]  }
  0x8f   :  { %948 = vmatpush1.bf16.msra.mxu1 %v3811_v15  ;;  %v3831_v15 = vcombine.low %v214_v3, %v218_v4  ;;  %v3814_v3 = vcombine.high %v197_v59, %v201_v60  ;;  %v4299_v4 = vld [vmem:[#allocation7 + $0xc4] ss:$16 sps:$4 sm:$0xff]  }
  0x90   :  { %949 = vmatprep.subr.bf16.mxu1 %v3820_v22  ;;  %1030 = vmatpush1.bf16.msra.mxu0 %v3815_v0  ;;  %v234_v22 = vld [vmem:[#allocation5 + $0x3f0] sm:$0xff]  ;;  %v3805_v0 = vcombine.low %v189_v52, %v193_v53 }
  0x91   :  { %1031 = vmatprep.subr.bf16.mxu0 %v3824_v1  ;;  %v3848_v26 = vcombine.high %v230_v21, %v234_v22  ;;  %v3847_v32 = vcombine.low %v230_v21, %v234_v22  ;;  %v205_v1 = vld [vmem:[#allocation5 + $0x308] sm:$0xff]  ;;  %v4309_v22 = vld [vmem:[#allocation7 + $0x100] ss:$16 sps:$4 sm:$0xff]  }
  0x92   :  { %v233_v21 = vld [vmem:[#allocation5 + $0x3e8] sm:$0xff] }
  0x93   :  { %950 = vmatpush1.bf16.msra.mxu1 %v3819_v25  ;;  %v3839_v25 = vcombine.low %v222_v11, %v226_v12  ;;  %v221_v12 = vld [vmem:[#allocation5 + $0x388] sm:$0xff] }
  0x94   :  { %951 = vmatprep.subr.bf16.mxu1 %v3828_v30  ;;  %1032 = vmatpush1.bf16.msra.mxu0 %v3823_v7  ;;  %v3766_v30 = vcombine.high %v149_v20, %v153_v24  ;;  %v217_v7 = vld [vmem:[#allocation5 + $0x368] sm:$0xff] }
  0x95   :  { %1033 = vmatprep.subr.bf16.mxu0 %v3832_v8  ;;  %v4297_v8 = vld [vmem:[#allocation7 + $0xc0] ss:$16 sps:$4 sm:$0xff]  }
  0x97   :  { %952 = vmatpush1.bf16.msra.mxu1 %v3827_v33  ;;  %v3765_v33 = vcombine.low %v149_v20, %v153_v24  ;;  %v229_v20 = vld [vmem:[#allocation5 + $0x3c8] sm:$0xff]  ;;  %v4317_v24 = vld [vmem:[#allocation7 + $0x124] ss:$16 sps:$4 sm:$0xff]  }
  0x98   :  { %953 = vmatprep.subr.bf16.mxu1 %v3836_v38  ;;  %1034 = vmatpush1.bf16.msra.mxu0 %v3831_v15  ;;  %v4269_v38 = vld [vmem:[#allocation7 + $0x24] ss:$16 sps:$4 sm:$0xff]   ;;  %v3830_v15 = vcombine.high %v213_v6, %v217_v7  ;;  %v3846_v29 = vcombine.high %v229_v20, %v233_v21 }
  0x99   :  { %1035 = vmatprep.subr.bf16.mxu0 %v3840_v16  ;;  %v4311_v16 = vld [vmem:[#allocation7 + $0x104] ss:$16 sps:$4 sm:$0xff]  }
  0x9b   :  { %954 = vmatpush1.bf16.msra.mxu1 %v3835_v41  ;;  %v177_v41 = vld [vmem:[#allocation5 + $0x228] sm:$0xff] }
  0x9c   :  { %955 = vmatprep.subr.bf16.mxu1 %v3844_v46  ;;  %1036 = vmatpush1.bf16.msra.mxu0 %v3839_v25  ;;  %v181_v46 = vld [vmem:[#allocation5 + $0x248] sm:$0xff]  ;;  %v3789_v51 = vcombine.low %v173_v40, %v177_v41 }
  0x9d   :  { %1037 = vmatprep.subr.bf16.mxu0 %v3848_v26  ;;  %v3798_v55 = vcombine.high %v181_v46, %v185_v47  ;;  %v111_v26 = vld [vmem:[#allocation5 + $0x18] sm:$0xff] }
  0x9f   :  { %956 = vmatpush1.bf16.msra.mxu1 %v3843_v49  ;;  %v3790_v49 = vcombine.high %v173_v40, %v177_v41  ;;  %v4327_v40 = vld [vmem:[#allocation7 + $0x160] ss:$16 sps:$4 sm:$0xff]  }
  0xa0   :  { %966 = vmatprep.subr.bf16.mxu1 %v3726_v54  ;;  %1038 = vmatpush1.bf16.msra.mxu0 %v3847_v32  ;;  %v4279_v54 = vld [vmem:[#allocation7 + $0x60] ss:$16 sps:$4 sm:$0xff]   ;;  %v119_v32 = vld [vmem:[#allocation5 + $0x58] sm:$0xff] }
  0xa1   :  { %2679 = vmatprep.subr.bf16.mxu0 %v4263_v31  ;;  %v3845_v31 = vcombine.low %v229_v20, %v233_v21 }
  0xa2   :  { %958 = vmatmul.mubr.bf16.vlgmr.msra.gmra.mrb[0].mxu1 %v5030_v56 }
  0xa3   :  { %967 = vmatpush1.bf16.msra.mxu1 %v3725_v58  ;;  %998 = vmatprep.mubr.bf16.mxu1 %v5024_v19  ;;  %v3797_v58 = vcombine.low %v181_v46, %v185_v47  ;;  %v4333_v46 = vld [vmem:[#allocation7 + $0x180] ss:$16 sps:$4 sm:$0xff]  }
  0xa4   :  { %968 = vmatprep.subr.bf16.mxu1 %v3734_v62  ;;  %1040 = vmatmul.mubr.bf16.vlgmr.msra.gmra.mrb[0].mxu0 %v5030_v56  ;;  %v3806_v62 = vcombine.high %v189_v52, %v193_v53  ;;  %v4339_v52 = vld [vmem:[#allocation7 + $0x1a0] ss:$16 sps:$4 sm:$0xff]  }
  0xa5   :  { %2680 = vmatpush1.bf16.msra.mxu0 %v4261_v36  ;;  %v4329_v36 = vld [vmem:[#allocation7 + $0x164] ss:$16 sps:$4 sm:$0xff]  }
  0xa6   :  { %2681 = vmatprep.subr.bf16.mxu0 %v4269_v38  ;;  %v127_v38 = vld [vmem:[#allocation5 + $0x98] sm:$0xff] }
  0xa7   :  { %969 = vmatpush1.bf16.msra.mxu1 %v3733_v2  ;;  %v209_v2 = vld [vmem:[#allocation5 + $0x328] sm:$0xff] }
  0xa8   :  { %970 = vmatprep.subr.bf16.mxu1 %v3742_v5  ;;  %v3813_v5 = vcombine.low %v197_v59, %v201_v60  ;;  %v3821_v11 = vcombine.low %v205_v1, %v209_v2  ;;  %v159_v59 = vld [vmem:[#allocation5 + $0x198] sm:$0xff] }
  0xa9   :  { %2682 = vmatpush1.bf16.msra.mxu0 %v4267_v42  ;;  %v4335_v42 = vld [vmem:[#allocation7 + $0x184] ss:$16 sps:$4 sm:$0xff]   ;;  %v163_v60 = vld [vmem:[#allocation5 + $0x1b8] sm:$0xff] }
  0xaa   :  { %2683 = vmatprep.subr.bf16.mxu0 %v4275_v44  ;;  %v135_v44 = vld [vmem:[#allocation5 + $0xd8] sm:$0xff] }
  0xab   :  { %971 = vmatpush1.bf16.msra.mxu1 %v3741_v9  ;;  %v3822_v9 = vcombine.high %v205_v1, %v209_v2  ;;  %v4347_v1 = vld [vmem:[#allocation7 + $0x1c4] ss:$16 sps:$4 sm:$0xff]   ;;  %v171_v2 = vld [vmem:[#allocation5 + $0x1f8] sm:$0xff] }
  0xac   :  { %972 = vmatprep.subr.bf16.mxu1 %v3750_v13  ;;  %v225_v13 = vld [vmem:[#allocation5 + $0x3a8] sm:$0xff] }
  0xad   :  { %2684 = vmatpush1.bf16.msra.mxu0 %v4273_v48  ;;  %v3837_v25 = vcombine.low %v221_v12, %v225_v13  ;;  %v4341_v48 = vld [vmem:[#allocation7 + $0x1a4] ss:$16 sps:$4 sm:$0xff]  }
  0xae   :  { %2685 = vmatprep.subr.bf16.mxu0 %v4281_v50  ;;  %v143_v50 = vld [vmem:[#allocation5 + $0x118] sm:$0xff] }
  0xaf   :  { %973 = vmatpush1.bf16.msra.mxu1 %v3749_v17  ;;  %v3829_v17 = vcombine.low %v213_v6, %v217_v7  ;;  %v4353_v6 = vld [vmem:[#allocation7 + $0x1e4] ss:$16 sps:$4 sm:$0xff]   ;;  %v179_v7 = vld [vmem:[#allocation5 + $0x238] sm:$0xff] }
  0xb0   :  { %974 = vmatprep.subr.bf16.mxu1 %v3758_v23  ;;  %v3838_v23 = vcombine.high %v221_v12, %v225_v13  ;;  %v183_v12 = vld [vmem:[#allocation5 + $0x258] sm:$0xff] }
  0xb1   :  { %2686 = vmatpush1.bf16.msra.mxu0 %v4279_v54  ;;  %v187_v13 = vld [vmem:[#allocation5 + $0x278] sm:$0xff] }
  0xb2   :  { %2687 = vmatprep.subr.bf16.mxu0 %v4287_v57  ;;  %v155_v57 = vld [vmem:[#allocation5 + $0x178] sm:$0xff]  ;;  %v3801_v20 = vcombine.low %v183_v12, %v187_v13 }
  0xb3   :  { %975 = vmatpush1.bf16.msra.mxu1 %v3757_v27  ;;  %v115_v27 = vld [vmem:[#allocation5 + $0x38] sm:$0xff] }
  0xb4   :  { %976 = vmatprep.subr.bf16.mxu1 %v3766_v30  ;;  %v4323_v30 = vld [vmem:[#allocation7 + $0x144] ss:$16 sps:$4 sm:$0xff]   ;;  %v3730_v35 = vcombine.high %v111_v26, %v115_v27 }
  0xb5   :  { %2688 = vmatpush1.bf16.msra.mxu0 %v4285_v61 }
  0xb6   :  { %2689 = vmatprep.subr.bf16.mxu0 %v4293_v63  ;;  %v3778_v63 = vcombine.high %v159_v59, %v163_v60 }
  0xb7   :  { %977 = vmatpush1.bf16.msra.mxu1 %v3765_v33  ;;  %v123_v33 = vld [vmem:[#allocation5 + $0x78] sm:$0xff] }
  0xb8   :  { %978 = vmatprep.subr.bf16.mxu1 %v3774_v37  ;;  %v3729_v37 = vcombine.low %v111_v26, %v115_v27  ;;  %v3738_v41 = vcombine.high %v119_v32, %v123_v33  ;;  %v207_v26 = vld [vmem:[#allocation5 + $0x318] sm:$0xff] }
  0xb9   :  { %2690 = vmatpush1.bf16.msra.mxu0 %v4291_v18  ;;  %v4345_v18 = vld [vmem:[#allocation7 + $0x1c0] ss:$16 sps:$4 sm:$0xff]   ;;  %v211_v27 = vld [vmem:[#allocation5 + $0x338] sm:$0xff] }
  0xba   :  { %2691 = vmatprep.subr.bf16.mxu0 %v4299_v4 }
  0xbb   :  { %979 = vmatpush1.bf16.msra.mxu1 %v3773_v39  ;;  %v131_v39 = vld [vmem:[#allocation5 + $0xb8] sm:$0xff] }
  0xbc   :  { %980 = vmatprep.subr.bf16.mxu1 %v3782_v43  ;;  %v3737_v43 = vcombine.low %v119_v32, %v123_v33  ;;  %v3746_v47 = vcombine.high %v127_v38, %v131_v39  ;;  %v3825_v32 = vcombine.low %v207_v26, %v211_v27 }
  0xbd   :  { %2692 = vmatpush1.bf16.msra.mxu0 %v4297_v8  ;;  %v4351_v8 = vld [vmem:[#allocation7 + $0x1e0] ss:$16 sps:$4 sm:$0xff]  }
  0xbe   :  { %2693 = vmatprep.subr.bf16.mxu0 %v4305_v10 }
  0xbf   :  { %981 = vmatpush1.bf16.msra.mxu1 %v3781_v45  ;;  %v139_v45 = vld [vmem:[#allocation5 + $0xf8] sm:$0xff] }
  0xc0   :  { %982 = vmatprep.subr.bf16.mxu1 %v3790_v49  ;;  %v3745_v49 = vcombine.low %v127_v38, %v131_v39  ;;  %v3754_v53 = vcombine.high %v135_v44, %v139_v45  ;;  %v3753_v54 = vcombine.low %v135_v44, %v139_v45  ;;  %v231_v38 = vld [vmem:[#allocation5 + $0x3d8] sm:$0xff] }
  0xc1   :  { %2694 = vmatpush1.bf16.msra.mxu0 %v4303_v14  ;;  %v235_v39 = vld [vmem:[#allocation5 + $0x3f8] sm:$0xff] }
  0xc2   :  { %2695 = vmatprep.subr.bf16.mxu0 %v4311_v16  ;;  %v191_v16 = vld [vmem:[#allocation5 + $0x298] sm:$0xff] }
  0xc3   :  { %983 = vmatpush1.bf16.msra.mxu1 %v3789_v51  ;;  %v147_v51 = vld [vmem:[#allocation5 + $0x138] sm:$0xff] }
  0xc4   :  { %984 = vmatprep.subr.bf16.mxu1 %v3798_v55  ;;  %v151_v55 = vld [vmem:[#allocation5 + $0x158] sm:$0xff] }
  0xc5   :  { %2696 = vmatpush1.bf16.msra.mxu0 %v4309_v22  ;;  %v3770_v61 = vcombine.high %v151_v55, %v155_v57  ;;  %v199_v22 = vld [vmem:[#allocation5 + $0x2d8] sm:$0xff] }
  0xc6   :  { %2697 = vmatprep.subr.bf16.mxu0 %v4317_v24  ;;  %v4264_v44 = vld [vmem:[#allocation7 + $0x8] ss:$16 sps:$4 sm:$0xff]   ;;  %v4272_v45 = vld [vmem:[#allocation7 + $0x2c] ss:$16 sps:$4 sm:$0xff]  }
  0xc7   :  { %985 = vmatpush1.bf16.msra.mxu1 %v3797_v58  ;;  %v3761_v58 = vcombine.low %v143_v50, %v147_v51 }
  0xc8   :  { %986 = vmatprep.subr.bf16.mxu1 %v3806_v62  ;;  %v3769_v62 = vcombine.low %v151_v55, %v155_v57  ;;  %v4300_v55 = vld [vmem:[#allocation7 + $0xc8] ss:$16 sps:$4 sm:$0xff]   ;;  %v4308_v57 = vld [vmem:[#allocation7 + $0xec] ss:$16 sps:$4 sm:$0xff]  }
  0xc9   :  { %2698 = vmatpush1.bf16.msra.mxu0 %v4315_v28 }
  0xca   :  { %2699 = vmatprep.subr.bf16.mxu0 %v4323_v30  ;;  %v215_v30 = vld [vmem:[#allocation5 + $0x358] sm:$0xff] }
  0xcb   :  { %987 = vmatpush1.bf16.msra.mxu1 %v3805_v0  ;;  %v167_v0 = vld [vmem:[#allocation5 + $0x1d8] sm:$0xff] }
  0xcc   :  { %988 = vmatprep.subr.bf16.mxu1 %v3814_v3  ;;  %v3777_v3 = vcombine.low %v159_v59, %v163_v60  ;;  %v3786_v4 = vcombine.high %v167_v0, %v171_v2  ;;  %v4312_v59 = vld [vmem:[#allocation7 + $0x108] ss:$16 sps:$4 sm:$0xff]   ;;  %v4320_v60 = vld [vmem:[#allocation7 + $0x12c] ss:$16 sps:$4 sm:$0xff]  }
  0xcd   :  { %2700 = vmatpush1.bf16.msra.mxu0 %v4321_v34  ;;  %v223_v34 = vld [vmem:[#allocation5 + $0x398] sm:$0xff] }
  0xce   :  { %2701 = vmatprep.subr.bf16.mxu0 %v4329_v36 }
  0xcf   :  { %989 = vmatpush1.bf16.msra.mxu1 %v3813_v5  ;;  %v175_v5 = vld [vmem:[#allocation5 + $0x218] sm:$0xff] }
  0xd0   :  { %990 = vmatprep.subr.bf16.mxu1 %v3822_v9  ;;  %v3785_v9 = vcombine.low %v167_v0, %v171_v2  ;;  %v3794_v10 = vcombine.high %v175_v5, %v179_v7  ;;  %v3793_v14 = vcombine.low %v175_v5, %v179_v7  ;;  %v4332_v0 = vld [vmem:[#allocation7 + $0x16c] ss:$16 sps:$4 sm:$0xff]  }
  0xd1   :  { %2702 = vmatpush1.bf16.msra.mxu0 %v4327_v40  ;;  %v4338_v2 = vld [vmem:[#allocation7 + $0x18c] ss:$16 sps:$4 sm:$0xff]  }
  0xd2   :  { %2703 = vmatprep.subr.bf16.mxu0 %v4335_v42  ;;  %v3849_v42 = vcombine.low %v231_v38, %v235_v39  ;;  %v4350_v5 = vld [vmem:[#allocation7 + $0x1cc] ss:$16 sps:$4 sm:$0xff]  }
  0xd3   :  { %991 = vmatpush1.bf16.msra.mxu1 %v3821_v11  ;;  %v4359_v11 = vld [vmem:[#allocation7 + $0x204] ss:$16 sps:$4 sm:$0xff]   ;;  %v4356_v7 = vld [vmem:[#allocation7 + $0x1ec] ss:$16 sps:$4 sm:$0xff]  }
  0xd4   :  { %992 = vmatprep.subr.bf16.mxu1 %v3830_v15  ;;  %v3802_v15 = vcombine.high %v183_v12, %v187_v13  ;;  %v5046_v13 = vld [vmem:[%s5114_s2] sm:$0xff] }
  0xd5   :  { %2704 = vmatpush1.bf16.msra.mxu0 %v4333_v46  ;;  %v4270_v46 = vld [vmem:[#allocation7 + $0x28] ss:$16 sps:$4 sm:$0xff]  }
  0xd6   :  { %2705 = vmatprep.subr.bf16.mxu0 %v4341_v48  ;;  %v4276_v48 = vld [vmem:[#allocation7 + $0x48] ss:$16 sps:$4 sm:$0xff]  }
  0xd7   :  { %993 = vmatpush1.bf16.msra.mxu1 %v3829_v17  ;;  %v195_v17 = vld [vmem:[#allocation5 + $0x2b8] sm:$0xff] }
  0xd8   :  { %994 = vmatprep.subr.bf16.mxu1 %v3838_v23  ;;  %v3810_v21 = vcombine.high %v191_v16, %v195_v17  ;;  %v203_v23 = vld [vmem:[#allocation5 + $0x2f8] sm:$0xff]  ;;  %v3809_v24 = vcombine.low %v191_v16, %v195_v17 }
  0xd9   :  { %2706 = vmatpush1.bf16.msra.mxu0 %v4339_v52  ;;  %v3817_v28 = vcombine.low %v199_v22, %v203_v23  ;;  %v4288_v52 = vld [vmem:[#allocation7 + $0x88] ss:$16 sps:$4 sm:$0xff]  }
  0xda   :  { %2707 = vmatprep.subr.bf16.mxu0 %v4347_v1  ;;  %v4330_v1 = vld [vmem:[#allocation7 + $0x168] ss:$16 sps:$4 sm:$0xff]  }
  0xdb   :  { %995 = vmatpush1.bf16.msra.mxu1 %v3837_v25  ;;  %v3818_v25 = vcombine.high %v199_v22, %v203_v23 }
  0xdc   :  { %996 = vmatprep.subr.bf16.mxu1 %v3846_v29  ;;  %v3826_v29 = vcombine.high %v207_v26, %v211_v27 }
  0xdd   :  { %2708 = vmatpush1.bf16.msra.mxu0 %v4345_v18  ;;  %v4336_v18 = vld [vmem:[#allocation7 + $0x188] ss:$16 sps:$4 sm:$0xff]  }
  0xde   :  { %2709 = vmatprep.subr.bf16.mxu0 %v4353_v6  ;;  %v4348_v6 = vld [vmem:[#allocation7 + $0x1c8] ss:$16 sps:$4 sm:$0xff]  }
  0xdf   :  { %997 = vmatpush1.bf16.msra.mxu1 %v3845_v31  ;;  %v219_v31 = vld [vmem:[#allocation5 + $0x378] sm:$0xff] }
  0xe0   :  { %1048 = vmatprep.subr.bf16.mxu1 %v3730_v35  ;;  %v3834_v33 = vcombine.high %v215_v30, %v219_v31  ;;  %v227_v35 = vld [vmem:[#allocation5 + $0x3b8] sm:$0xff]  ;;  %v3833_v36 = vcombine.low %v215_v30, %v219_v31  ;;  %v4357_v30 = vld [vmem:[#allocation7 + $0x200] ss:$16 sps:$4 sm:$0xff]  }
  0xe1   :  { %2710 = vmatpush1.bf16.msra.mxu0 %v4351_v8  ;;  %v3841_v40 = vcombine.low %v223_v34, %v227_v35  ;;  %v4354_v8 = vld [vmem:[#allocation7 + $0x1e8] ss:$16 sps:$4 sm:$0xff]  }
  0xe2   :  { %999 = vmatmul.mubr.bf16.vlgmr.msra.gmra.mrb[4].mxu1 %v5030_v56  ;;  %2720 = vmatprep.subr.bf16.mxu0 %v4359_v11  ;;  %v4360_v31 = vld [vmem:[#allocation7 + $0x208] ss:$16 sps:$4 sm:$0xff]  }
  0xe3   :  { %1049 = vmatpush1.bf16.msra.mxu1 %v3729_v37  ;;  %1080 = vmatprep.mubr.bf16.mxu1 %v5024_v19  ;;  %v3762_v19 = vcombine.high %v143_v50, %v147_v51  ;;  %v3842_v37 = vcombine.high %v223_v34, %v227_v35  ;;  %v4282_v50 = vld [vmem:[#allocation7 + $0x68] ss:$16 sps:$4 sm:$0xff]   ;;  %v4290_v51 = vld [vmem:[#allocation7 + $0x8c] ss:$16 sps:$4 sm:$0xff]   ;;  %v4363_v35 = vld [vmem:[#allocation7 + $0x220] ss:$16 sps:$4 sm:$0xff]  }
  0xe4   :  { %1050 = vmatprep.subr.bf16.mxu1 %v3738_v41  ;;  %v3850_v41 = vcombine.high %v231_v38, %v235_v39  ;;  %v4368_v34 = vld [vmem:[#allocation7 + $0x22c] ss:$16 sps:$4 sm:$0xff]   ;;  %v4369_v39 = vld [vmem:[#allocation7 + $0x240] ss:$16 sps:$4 sm:$0xff]  }
  0xe5   :  { %v4374_v38 = vld [vmem:[#allocation7 + $0x24c] ss:$16 sps:$4 sm:$0xff]  }
  0xe7   :  { %1051 = vmatpush1.bf16.msra.mxu1 %v3737_v43  ;;  %v4266_v43 = vld [vmem:[#allocation7 + $0xc] ss:$16 sps:$4 sm:$0xff]  }
  0xe8   :  { %1052 = vmatprep.subr.bf16.mxu1 %v3746_v47  ;;  %v4278_v47 = vld [vmem:[#allocation7 + $0x4c] ss:$16 sps:$4 sm:$0xff]  }
  0xeb   :  { %1053 = vmatpush1.bf16.msra.mxu1 %v3745_v49  ;;  %v4284_v49 = vld [vmem:[#allocation7 + $0x6c] ss:$16 sps:$4 sm:$0xff]  }
  0xec   :  { %1054 = vmatprep.subr.bf16.mxu1 %v3754_v53  ;;  %v4296_v53 = vld [vmem:[#allocation7 + $0xac] ss:$16 sps:$4 sm:$0xff]  }
  0xef   :  { %1055 = vmatpush1.bf16.msra.mxu1 %v3753_v54  ;;  %v4294_v54 = vld [vmem:[#allocation7 + $0xa8] ss:$16 sps:$4 sm:$0xff]  }
  0xf0   :  { %1056 = vmatprep.subr.bf16.mxu1 %v3762_v19  ;;  %v4306_v19 = vld [vmem:[#allocation7 + $0xe8] ss:$16 sps:$4 sm:$0xff]  }
  0xf3   :  { %1057 = vmatpush1.bf16.msra.mxu1 %v3761_v58  ;;  %v4314_v58 = vld [vmem:[#allocation7 + $0x10c] ss:$16 sps:$4 sm:$0xff]  }
  0xf4   :  { %1058 = vmatprep.subr.bf16.mxu1 %v3770_v61  ;;  %v4318_v61 = vld [vmem:[#allocation7 + $0x128] ss:$16 sps:$4 sm:$0xff]  }
  0xf7   :  { %1059 = vmatpush1.bf16.msra.mxu1 %v3769_v62  ;;  %v4326_v62 = vld [vmem:[#allocation7 + $0x14c] ss:$16 sps:$4 sm:$0xff]  }
  0xf8   :  { %1060 = vmatprep.subr.bf16.mxu1 %v3778_v63  ;;  %v4324_v63 = vld [vmem:[#allocation7 + $0x148] ss:$16 sps:$4 sm:$0xff]  }
  0xfb   :  { %1061 = vmatpush1.bf16.msra.mxu1 %v3777_v3  ;;  %v4344_v3 = vld [vmem:[#allocation7 + $0x1ac] ss:$16 sps:$4 sm:$0xff]  }
  0xfc   :  { %1062 = vmatprep.subr.bf16.mxu1 %v3786_v4  ;;  %v4342_v4 = vld [vmem:[#allocation7 + $0x1a8] ss:$16 sps:$4 sm:$0xff]  }
  0xff   :  { %1063 = vmatpush1.bf16.msra.mxu1 %v3785_v9  ;;  %v4362_v9 = vld [vmem:[#allocation7 + $0x20c] ss:$16 sps:$4 sm:$0xff]  }
 0x100   :  { %1064 = vmatprep.subr.bf16.mxu1 %v3794_v10  ;;  %v238_v10 = vlaneseq }
 0x102   :  { %v5038_v11 = vshrl.u32 %v238_v10, 7  ;;  %v4420_v10 = vld [vmem:[#allocation7 + $0x348] ss:$16 sps:$4 sm:$0xff]  }
 0x103   :  { %1065 = vmatpush1.bf16.msra.mxu1 %v3793_v14 }
 0x104   :  { %1066 = vmatprep.subr.bf16.mxu1 %v3802_v15  ;;  %v5041_v12 = vsub.s32 0, %v5038_v11  ;;  %v5049_v14 = vsub.s32 1, %v5038_v11 }
 0x106   :  { %v241_v15 = vrot.slane %v5046_v13, %v5041_v12  ;;  %v245_v16 = vrot.slane %v5046_v13, %v5049_v14 }
 0x107   :  { %1067 = vmatpush1.bf16.msra.mxu1 %v3801_v20 }
 0x108   :  { %1068 = vmatprep.subr.bf16.mxu1 %v3810_v21 }
 0x10b   :  { %1069 = vmatpush1.bf16.msra.mxu1 %v3809_v24 }
 0x10c   :  { %1070 = vmatprep.subr.bf16.mxu1 %v3818_v25 }
 0x10f   :  { %1071 = vmatpush1.bf16.msra.mxu1 %v3817_v28 }
 0x110   :  { %1072 = vmatprep.subr.bf16.mxu1 %v3826_v29 }
 0x113   :  { %1073 = vmatpush1.bf16.msra.mxu1 %v3825_v32 }
 0x114   :  { %1074 = vmatprep.subr.bf16.mxu1 %v3834_v33  ;;  %v4365_v33 = vld [vmem:[#allocation7 + $0x224] ss:$16 sps:$4 sm:$0xff]  }
 0x117   :  { %1075 = vmatpush1.bf16.msra.mxu1 %v3833_v36  ;;  %v4366_v36 = vld [vmem:[#allocation7 + $0x228] ss:$16 sps:$4 sm:$0xff]  }
 0x118   :  { %1076 = vmatprep.subr.bf16.mxu1 %v3842_v37  ;;  %v4371_v37 = vld [vmem:[#allocation7 + $0x244] ss:$16 sps:$4 sm:$0xff]  }
 0x11b   :  { %1077 = vmatpush1.bf16.msra.mxu1 %v3841_v40  ;;  %v4372_v40 = vld [vmem:[#allocation7 + $0x248] ss:$16 sps:$4 sm:$0xff]  }
 0x11c   :  { %1078 = vmatprep.subr.bf16.mxu1 %v3850_v41  ;;  %v4377_v41 = vld [vmem:[#allocation7 + $0x264] ss:$16 sps:$4 sm:$0xff]  }
 0x11f   :  { %1079 = vmatpush1.bf16.msra.mxu1 %v3849_v42  ;;  %v4380_v42 = vld [vmem:[#allocation7 + $0x26c] ss:$16 sps:$4 sm:$0xff]  }
 0x120   :  { %2843 = vmatprep.subr.bf16.mxu1 %v4266_v43  ;;  %v4375_v43 = vld [vmem:[#allocation7 + $0x260] ss:$16 sps:$4 sm:$0xff]  }
 0x122   :  { %1081 = vmatmul.mubr.bf16.vlgmr.msra.gmra.mrb[8].mxu1 %v5030_v56  ;;  %v4302_v56 = vld [vmem:[#allocation7 + $0xcc] ss:$16 sps:$4 sm:$0xff]  }
 0x123   :  { %2844 = vmatpush1.bf16.msra.mxu1 %v4264_v44  ;;  %v4378_v44 = vld [vmem:[#allocation7 + $0x268] ss:$16 sps:$4 sm:$0xff]  }
 0x124   :  { %2845 = vmatprep.subr.bf16.mxu1 %v4272_v45  ;;  %v4383_v45 = vld [vmem:[#allocation7 + $0x284] ss:$16 sps:$4 sm:$0xff]  }
 0x127   :  { %2846 = vmatpush1.bf16.msra.mxu1 %v4270_v46  ;;  %v4386_v46 = vld [vmem:[#allocation7 + $0x28c] ss:$16 sps:$4 sm:$0xff]  }
 0x128   :  { %2847 = vmatprep.subr.bf16.mxu1 %v4278_v47 }
 0x12b   :  { %2848 = vmatpush1.bf16.msra.mxu1 %v4276_v48  ;;  %v4381_v48 = vld [vmem:[#allocation7 + $0x280] ss:$16 sps:$4 sm:$0xff]  }
 0x12c   :  { %2849 = vmatprep.subr.bf16.mxu1 %v4284_v49  ;;  %v4384_v49 = vld [vmem:[#allocation7 + $0x288] ss:$16 sps:$4 sm:$0xff]  }
 0x12f   :  { %2850 = vmatpush1.bf16.msra.mxu1 %v4282_v50 }
 0x130   :  { %2851 = vmatprep.subr.bf16.mxu1 %v4290_v51  ;;  %v4389_v51 = vld [vmem:[#allocation7 + $0x2a4] ss:$16 sps:$4 sm:$0xff]  }
 0x133   :  { %2852 = vmatpush1.bf16.msra.mxu1 %v4288_v52  ;;  %v4392_v52 = vld [vmem:[#allocation7 + $0x2ac] ss:$16 sps:$4 sm:$0xff]  }
 0x134   :  { %2853 = vmatprep.subr.bf16.mxu1 %v4296_v53 }
 0x137   :  { %2854 = vmatpush1.bf16.msra.mxu1 %v4294_v54 }
 0x138   :  { %2855 = vmatprep.subr.bf16.mxu1 %v4302_v56  ;;  %v4387_v56 = vld [vmem:[#allocation7 + $0x2a0] ss:$16 sps:$4 sm:$0xff]  }
 0x13b   :  { %2856 = vmatpush1.bf16.msra.mxu1 %v4300_v55  ;;  %v4390_v55 = vld [vmem:[#allocation7 + $0x2a8] ss:$16 sps:$4 sm:$0xff]  }
 0x13c   :  { %2857 = vmatprep.subr.bf16.mxu1 %v4308_v57  ;;  %v4395_v57 = vld [vmem:[#allocation7 + $0x2c4] ss:$16 sps:$4 sm:$0xff]  }
 0x13f   :  { %2858 = vmatpush1.bf16.msra.mxu1 %v4306_v19  ;;  %v4398_v19 = vld [vmem:[#allocation7 + $0x2cc] ss:$16 sps:$4 sm:$0xff]  }
 0x140   :  { %2859 = vmatprep.subr.bf16.mxu1 %v4314_v58  ;;  %v4393_v58 = vld [vmem:[#allocation7 + $0x2c0] ss:$16 sps:$4 sm:$0xff]  }
 0x143   :  { %2860 = vmatpush1.bf16.msra.mxu1 %v4312_v59  ;;  %v4396_v59 = vld [vmem:[#allocation7 + $0x2c8] ss:$16 sps:$4 sm:$0xff]  }
 0x144   :  { %2861 = vmatprep.subr.bf16.mxu1 %v4320_v60  ;;  %v4401_v60 = vld [vmem:[#allocation7 + $0x2e4] ss:$16 sps:$4 sm:$0xff]  }
 0x147   :  { %2862 = vmatpush1.bf16.msra.mxu1 %v4318_v61  ;;  %v4404_v61 = vld [vmem:[#allocation7 + $0x2ec] ss:$16 sps:$4 sm:$0xff]  }
 0x148   :  { %2863 = vmatprep.subr.bf16.mxu1 %v4326_v62  ;;  %v4399_v62 = vld [vmem:[#allocation7 + $0x2e0] ss:$16 sps:$4 sm:$0xff]  }
 0x14b   :  { %2864 = vmatpush1.bf16.msra.mxu1 %v4324_v63  ;;  %v4402_v63 = vld [vmem:[#allocation7 + $0x2e8] ss:$16 sps:$4 sm:$0xff]  }
 0x14c   :  { %2865 = vmatprep.subr.bf16.mxu1 %v4332_v0  ;;  %v4407_v0 = vld [vmem:[#allocation7 + $0x304] ss:$16 sps:$4 sm:$0xff]  }
 0x14f   :  { %2866 = vmatpush1.bf16.msra.mxu1 %v4330_v1  ;;  %v4410_v1 = vld [vmem:[#allocation7 + $0x30c] ss:$16 sps:$4 sm:$0xff]  }
 0x150   :  { %2867 = vmatprep.subr.bf16.mxu1 %v4338_v2  ;;  %v4405_v2 = vld [vmem:[#allocation7 + $0x300] ss:$16 sps:$4 sm:$0xff]  }
 0x153   :  { %2868 = vmatpush1.bf16.msra.mxu1 %v4336_v18  ;;  %v4408_v18 = vld [vmem:[#allocation7 + $0x308] ss:$16 sps:$4 sm:$0xff]  }
 0x154   :  { %2869 = vmatprep.subr.bf16.mxu1 %v4344_v3  ;;  %v4413_v3 = vld [vmem:[#allocation7 + $0x324] ss:$16 sps:$4 sm:$0xff]  }
 0x157   :  { %2870 = vmatpush1.bf16.msra.mxu1 %v4342_v4  ;;  %v4416_v4 = vld [vmem:[#allocation7 + $0x32c] ss:$16 sps:$4 sm:$0xff]  }
 0x158   :  { %2871 = vmatprep.subr.bf16.mxu1 %v4350_v5  ;;  %v4411_v5 = vld [vmem:[#allocation7 + $0x320] ss:$16 sps:$4 sm:$0xff]  }
 0x15b   :  { %2872 = vmatpush1.bf16.msra.mxu1 %v4348_v6  ;;  %v4414_v6 = vld [vmem:[#allocation7 + $0x328] ss:$16 sps:$4 sm:$0xff]  }
 0x15c   :  { %2873 = vmatprep.subr.bf16.mxu1 %v4356_v7  ;;  %v4419_v7 = vld [vmem:[#allocation7 + $0x344] ss:$16 sps:$4 sm:$0xff]  }
 0x15f   :  { %2874 = vmatpush1.bf16.msra.mxu1 %v4354_v8  ;;  %v4422_v8 = vld [vmem:[#allocation7 + $0x34c] ss:$16 sps:$4 sm:$0xff]  }
 0x160   :  { %2884 = vmatprep.subr.bf16.mxu1 %v4362_v9  ;;  %v4417_v9 = vld [vmem:[#allocation7 + $0x340] ss:$16 sps:$4 sm:$0xff]  }
 0x175   :  { %v959_v17 = vpop.f32.mrb[0].mxu1 }
 0x176   :  { %v960_v20 = vadd.f32 %v959_v17, %v241_v15  ;;  %v961_v21 = vpop.f32.mrb[1].mxu1  ;;  %v4425_v15 = vld [vmem:[#allocation7 + $0x364] ss:$16 sps:$4 sm:$0xff]   ;;  %v4423_v17 = vld [vmem:[#allocation7 + $0x360] ss:$16 sps:$4 sm:$0xff]  }
 0x177   :  { %v962_v22 = vadd.f32 %v961_v21, %v245_v16  ;;  %v963_v23 = vpop.f32.mrb[2].mxu1  ;;  %v5055_v47 = vpop.f32.mrb[0].mxu0  ;;  %v4428_v16 = vld [vmem:[#allocation7 + $0x36c] ss:$16 sps:$4 sm:$0xff]   ;;  %v4431_v21 = vld [vmem:[#allocation7 + $0x384] ss:$16 sps:$4 sm:$0xff]  }
 0x178   :  { %vm1089_vm0 = vcmp.gt.f32.partialorder %v960_v20, 0.0  ;;  %v1097_v24 = vmul.f32 0.2, %v960_v20  ;;  %v964_v25 = vpop.f32.mrb[3].mxu1  ;;  %v5057_v50 = vpop.f32.mrb[1].mxu0  ;;  %v260_v23 = vsub.s32 5, %v5038_v11 }
 0x179   :  { %vm1090_vm1 = vcmp.gt.f32.partialorder %v962_v22, 0.0  ;;  %v1098_v26 = vmul.f32 0.2, %v962_v22  ;;  %v1045_v53 = vpop.f32.mrb[2].mxu0  ;;  %v4432_v25 = vld [vmem:[#allocation7 + $0x388] ss:$16 sps:$4 sm:$0xff]  }
 0x17a   :  { %v1105_v27 = vsel %vm1089_vm0, %v960_v20, %v1097_v24  ;;  %v1046_v54 = vpop.f32.mrb[3].mxu0  ;;  %v4426_v20 = vld [vmem:[#allocation7 + $0x368] ss:$16 sps:$4 sm:$0xff]   ;;  %v4429_v24 = vld [vmem:[#allocation7 + $0x380] ss:$16 sps:$4 sm:$0xff]  }
 0x17b   :  { %v1106_v28 = vsel %vm1090_vm1, %v962_v22, %v1098_v26  ;;  %v1113_v32 = vpack.c.bf16 %v1105_v27, %v1105_v27  ;;  %v4434_v22 = vld [vmem:[#allocation7 + $0x38c] ss:$16 sps:$4 sm:$0xff]   ;;  %v4437_v26 = vld [vmem:[#allocation7 + $0x3a4] ss:$16 sps:$4 sm:$0xff]  }
 0x17c   :  { %v1114_v29 = vpack.c.bf16 %v1106_v28, %v1106_v28  ;;  %v4440_v27 = vld [vmem:[#allocation7 + $0x3ac] ss:$16 sps:$4 sm:$0xff]   ;;  %v248_v28 = vsub.s32 2, %v5038_v11 }
 0x17e   :  { %2711 = vmatprep.mubr.bf16.mxu0 %v1114_v29  ;;  %2875 = vmatprep.mubr.bf16.mxu1 %v1114_v29  ;;  %v252_v29 = vsub.s32 3, %v5038_v11 }
 0x17f   :  { %2712 = vmatmul.mubr.bf16.vlgmr.msra.gmra.mrb[4].mxu0 %v1113_v32  ;;  %2876 = vmatmul.mubr.bf16.vlgmr.msra.gmra.mrb[12].mxu1 %v1113_v32  ;;  %v4438_v32 = vld [vmem:[#allocation7 + $0x3a8] ss:$16 sps:$4 sm:$0xff]  }
 0x180   :  { %2721 = vmatpush1.bf16.msra.mxu0 %v4357_v30  ;;  %2885 = vmatpush1.bf16.msra.mxu1 %v4360_v31  ;;  %v261_v30 = vrot.slane %v5046_v13, %v260_v23  ;;  %v4435_v31 = vld [vmem:[#allocation7 + $0x3a0] ss:$16 sps:$4 sm:$0xff]   ;;  %v4486_v23 = vld [vmem:[#allocation7 + $0x4a8] ss:$16 sps:$4 sm:$0xff]  }
 0x181   :  { %2722 = vmatprep.subr.bf16.mxu0 %v4365_v33  ;;  %2886 = vmatprep.subr.bf16.mxu1 %v4368_v34  ;;  %v4443_v33 = vld [vmem:[#allocation7 + $0x3c4] ss:$16 sps:$4 sm:$0xff]   ;;  %v4446_v34 = vld [vmem:[#allocation7 + $0x3cc] ss:$16 sps:$4 sm:$0xff]  }
 0x184   :  { %2723 = vmatpush1.bf16.msra.mxu0 %v4363_v35  ;;  %2887 = vmatpush1.bf16.msra.mxu1 %v4366_v36  ;;  %v249_v35 = vrot.slane %v5046_v13, %v248_v28  ;;  %v253_v36 = vrot.slane %v5046_v13, %v252_v29 }
 0x185   :  { %2724 = vmatprep.subr.bf16.mxu0 %v4371_v37  ;;  %2888 = vmatprep.subr.bf16.mxu1 %v4374_v38  ;;  %v1044_v37 = vadd.f32 %v5057_v50, %v261_v30  ;;  %v4441_v38 = vld [vmem:[#allocation7 + $0x3c0] ss:$16 sps:$4 sm:$0xff]   ;;  %v4497_v30 = vld [vmem:[#allocation7 + $0x4e4] ss:$16 sps:$4 sm:$0xff]  }
 0x187   :  { %vm1094_vm3 = vcmp.gt.f32.partialorder %v1044_v37, 0.0 }
 0x188   :  { %2725 = vmatpush1.bf16.msra.mxu0 %v4369_v39  ;;  %2889 = vmatpush1.bf16.msra.mxu1 %v4372_v40  ;;  %v4444_v39 = vld [vmem:[#allocation7 + $0x3c8] ss:$16 sps:$4 sm:$0xff]  }
 0x189   :  { %2726 = vmatprep.subr.bf16.mxu0 %v4377_v41  ;;  %2890 = vmatprep.subr.bf16.mxu1 %v4380_v42  ;;  %v4449_v41 = vld [vmem:[#allocation7 + $0x3e4] ss:$16 sps:$4 sm:$0xff]   ;;  %v4452_v42 = vld [vmem:[#allocation7 + $0x3ec] ss:$16 sps:$4 sm:$0xff]  }
 0x18c   :  { %2727 = vmatpush1.bf16.msra.mxu0 %v4375_v43  ;;  %2891 = vmatpush1.bf16.msra.mxu1 %v4378_v44 }
 0x18d   :  { %2728 = vmatprep.subr.bf16.mxu0 %v4383_v45  ;;  %2892 = vmatprep.subr.bf16.mxu1 %v4386_v46  ;;  %v4447_v45 = vld [vmem:[#allocation7 + $0x3e0] ss:$16 sps:$4 sm:$0xff]   ;;  %v4450_v46 = vld [vmem:[#allocation7 + $0x3e8] ss:$16 sps:$4 sm:$0xff]  }
 0x190   :  { %2729 = vmatpush1.bf16.msra.mxu0 %v4381_v48  ;;  %2893 = vmatpush1.bf16.msra.mxu1 %v4384_v49 }
 0x191   :  { %2730 = vmatprep.subr.bf16.mxu0 %v4389_v51  ;;  %2894 = vmatprep.subr.bf16.mxu1 %v4392_v52  ;;  %v4455_v51 = vld [vmem:[#allocation7 + $0x404] ss:$16 sps:$4 sm:$0xff]   ;;  %v1102_v52 = vmul.f32 0.2, %v1044_v37 }
 0x194   :  { %2731 = vmatpush1.bf16.msra.mxu0 %v4387_v56  ;;  %2895 = vmatpush1.bf16.msra.mxu1 %v4390_v55  ;;  %v4458_v56 = vld [vmem:[#allocation7 + $0x40c] ss:$16 sps:$4 sm:$0xff]  }
 0x195   :  { %2732 = vmatprep.subr.bf16.mxu0 %v4395_v57  ;;  %2896 = vmatprep.subr.bf16.mxu1 %v4398_v19  ;;  %v1110_v19 = vsel %vm1094_vm3, %v1044_v37, %v1102_v52  ;;  %v4504_v37 = vld [vmem:[#allocation7 + $0x508] ss:$16 sps:$4 sm:$0xff]   ;;  %v4527_v52 = vld [vmem:[#allocation7 + $0x584] ss:$16 sps:$4 sm:$0xff]  }
 0x198   :  { %2733 = vmatpush1.bf16.msra.mxu0 %v4393_v58  ;;  %2897 = vmatpush1.bf16.msra.mxu1 %v4396_v59  ;;  %v4453_v59 = vld [vmem:[#allocation7 + $0x400] ss:$16 sps:$4 sm:$0xff]  }
 0x199   :  { %2734 = vmatprep.subr.bf16.mxu0 %v4401_v60  ;;  %2898 = vmatprep.subr.bf16.mxu1 %v4404_v61  ;;  %v4456_v60 = vld [vmem:[#allocation7 + $0x408] ss:$16 sps:$4 sm:$0xff]  }
 0x19c   :  { %2735 = vmatpush1.bf16.msra.mxu0 %v4399_v62  ;;  %2899 = vmatpush1.bf16.msra.mxu1 %v4402_v63  ;;  %v4461_v62 = vld [vmem:[#allocation7 + $0x424] ss:$16 sps:$4 sm:$0xff]   ;;  %v4464_v63 = vld [vmem:[#allocation7 + $0x42c] ss:$16 sps:$4 sm:$0xff]  }
 0x19d   :  { %2736 = vmatprep.subr.bf16.mxu0 %v4407_v0  ;;  %2900 = vmatprep.subr.bf16.mxu1 %v4410_v1  ;;  %v1118_v0 = vpack.c.bf16 %v1110_v19, %v1110_v19  ;;  %v4459_v1 = vld [vmem:[#allocation7 + $0x420] ss:$16 sps:$4 sm:$0xff]  }
 0x1a0   :  { %2737 = vmatpush1.bf16.msra.mxu0 %v4405_v2  ;;  %2901 = vmatpush1.bf16.msra.mxu1 %v4408_v18  ;;  %v4462_v2 = vld [vmem:[#allocation7 + $0x428] ss:$16 sps:$4 sm:$0xff]   ;;  %v4467_v18 = vld [vmem:[#allocation7 + $0x444] ss:$16 sps:$4 sm:$0xff]  }
 0x1a1   :  { %2738 = vmatprep.subr.bf16.mxu0 %v4413_v3  ;;  %2902 = vmatprep.subr.bf16.mxu1 %v4416_v4  ;;  %v4470_v3 = vld [vmem:[#allocation7 + $0x44c] ss:$16 sps:$4 sm:$0xff]   ;;  %v4465_v4 = vld [vmem:[#allocation7 + $0x440] ss:$16 sps:$4 sm:$0xff]  }
 0x1a4   :  { %2739 = vmatpush1.bf16.msra.mxu0 %v4411_v5  ;;  %2903 = vmatpush1.bf16.msra.mxu1 %v4414_v6  ;;  %v4468_v5 = vld [vmem:[#allocation7 + $0x448] ss:$16 sps:$4 sm:$0xff]   ;;  %v4473_v6 = vld [vmem:[#allocation7 + $0x464] ss:$16 sps:$4 sm:$0xff]  }
 0x1a5   :  { %2740 = vmatprep.subr.bf16.mxu0 %v4419_v7  ;;  %2904 = vmatprep.subr.bf16.mxu1 %v4422_v8  ;;  %v4476_v7 = vld [vmem:[#allocation7 + $0x46c] ss:$16 sps:$4 sm:$0xff]   ;;  %v4471_v8 = vld [vmem:[#allocation7 + $0x460] ss:$16 sps:$4 sm:$0xff]  }
 0x1a8   :  { %2741 = vmatpush1.bf16.msra.mxu0 %v4417_v9  ;;  %2905 = vmatpush1.bf16.msra.mxu1 %v4420_v10  ;;  %v4474_v9 = vld [vmem:[#allocation7 + $0x468] ss:$16 sps:$4 sm:$0xff]   ;;  %v4479_v10 = vld [vmem:[#allocation7 + $0x484] ss:$16 sps:$4 sm:$0xff]  }
 0x1a9   :  { %2742 = vmatprep.subr.bf16.mxu0 %v4425_v15  ;;  %2906 = vmatprep.subr.bf16.mxu1 %v4428_v16  ;;  %v4482_v15 = vld [vmem:[#allocation7 + $0x48c] ss:$16 sps:$4 sm:$0xff]   ;;  %v4477_v16 = vld [vmem:[#allocation7 + $0x480] ss:$16 sps:$4 sm:$0xff]  }
 0x1ac   :  { %2743 = vmatpush1.bf16.msra.mxu0 %v4423_v17  ;;  %2907 = vmatpush1.bf16.msra.mxu1 %v4426_v20  ;;  %v4480_v17 = vld [vmem:[#allocation7 + $0x488] ss:$16 sps:$4 sm:$0xff]   ;;  %v4485_v20 = vld [vmem:[#allocation7 + $0x4a4] ss:$16 sps:$4 sm:$0xff]  }
 0x1ad   :  { %2744 = vmatprep.subr.bf16.mxu0 %v4431_v21  ;;  %2908 = vmatprep.subr.bf16.mxu1 %v4434_v22  ;;  %v4488_v21 = vld [vmem:[#allocation7 + $0x4ac] ss:$16 sps:$4 sm:$0xff]   ;;  %v4483_v22 = vld [vmem:[#allocation7 + $0x4a0] ss:$16 sps:$4 sm:$0xff]  }
 0x1b0   :  { %2745 = vmatpush1.bf16.msra.mxu0 %v4429_v24  ;;  %2909 = vmatpush1.bf16.msra.mxu1 %v4432_v25  ;;  %v4491_v24 = vld [vmem:[#allocation7 + $0x4c4] ss:$16 sps:$4 sm:$0xff]   ;;  %v4494_v25 = vld [vmem:[#allocation7 + $0x4cc] ss:$16 sps:$4 sm:$0xff]  }
 0x1b1   :  { %2746 = vmatprep.subr.bf16.mxu0 %v4437_v26  ;;  %2910 = vmatprep.subr.bf16.mxu1 %v4440_v27  ;;  %v4489_v26 = vld [vmem:[#allocation7 + $0x4c0] ss:$16 sps:$4 sm:$0xff]   ;;  %v4492_v27 = vld [vmem:[#allocation7 + $0x4c8] ss:$16 sps:$4 sm:$0xff]  }
 0x1b4   :  { %2747 = vmatpush1.bf16.msra.mxu0 %v4435_v31  ;;  %2911 = vmatpush1.bf16.msra.mxu1 %v4438_v32  ;;  %v4500_v31 = vld [vmem:[#allocation7 + $0x4ec] ss:$16 sps:$4 sm:$0xff]   ;;  %v4495_v32 = vld [vmem:[#allocation7 + $0x4e0] ss:$16 sps:$4 sm:$0xff]  }
 0x1b5   :  { %v1000_v40 = vpop.f32.mrb[4].mxu1  ;;  %2748 = vmatprep.subr.bf16.mxu0 %v4443_v33  ;;  %2912 = vmatprep.subr.bf16.mxu1 %v4446_v34  ;;  %v4498_v33 = vld [vmem:[#allocation7 + $0x4e8] ss:$16 sps:$4 sm:$0xff]   ;;  %v4503_v34 = vld [vmem:[#allocation7 + $0x504] ss:$16 sps:$4 sm:$0xff]  }
 0x1b6   :  { %v1001_v43 = vadd.f32 %v1000_v40, %v249_v35  ;;  %v1002_v44 = vpop.f32.mrb[5].mxu1  ;;  %v4506_v35 = vld [vmem:[#allocation7 + $0x50c] ss:$16 sps:$4 sm:$0xff]   ;;  %v4507_v40 = vld [vmem:[#allocation7 + $0x520] ss:$16 sps:$4 sm:$0xff]  }
 0x1b7   :  { %v1003_v48 = vadd.f32 %v1002_v44, %v253_v36  ;;  %v1004_v49 = vpop.f32.mrb[6].mxu1  ;;  %v4501_v36 = vld [vmem:[#allocation7 + $0x500] ss:$16 sps:$4 sm:$0xff]  }
 0x1b8   :  { %vm1091_vm2 = vcmp.gt.f32.partialorder %v1001_v43, 0.0  ;;  %v1099_v53 = vmul.f32 0.2, %v1001_v43  ;;  %2749 = vmatpush1.bf16.msra.mxu0 %v4441_v38  ;;  %2913 = vmatpush1.bf16.msra.mxu1 %v4444_v39  ;;  %v1005_v50 = vpop.f32.mrb[7].mxu1  ;;  %v4509_v38 = vld [vmem:[#allocation7 + $0x524] ss:$16 sps:$4 sm:$0xff]  }
 0x1b9   :  { %vm1092_vm4 = vcmp.gt.f32.partialorder %v1003_v48, 0.0  ;;  %v1100_v54 = vmul.f32 0.2, %v1003_v48  ;;  %2750 = vmatprep.subr.bf16.mxu0 %v4449_v41  ;;  %2914 = vmatprep.subr.bf16.mxu1 %v4452_v42  ;;  %v4512_v39 = vld [vmem:[#allocation7 + $0x52c] ss:$16 sps:$4 sm:$0xff]   ;;  %v256_v50 = vsub.s32 4, %v5038_v11 }
 0x1ba   :  { %v1107_v55 = vsel %vm1091_vm2, %v1001_v43, %v1099_v53  ;;  %v4510_v41 = vld [vmem:[#allocation7 + $0x528] ss:$16 sps:$4 sm:$0xff]   ;;  %v4515_v42 = vld [vmem:[#allocation7 + $0x544] ss:$16 sps:$4 sm:$0xff]   ;;  %v4518_v43 = vld [vmem:[#allocation7 + $0x54c] ss:$16 sps:$4 sm:$0xff]  }
 0x1bb   :  { %v1108_v57 = vsel %vm1092_vm4, %v1003_v48, %v1100_v54  ;;  %v1115_v61 = vpack.c.bf16 %v1107_v55, %v1107_v55  ;;  %v4513_v44 = vld [vmem:[#allocation7 + $0x540] ss:$16 sps:$4 sm:$0xff]   ;;  %v4524_v48 = vld [vmem:[#allocation7 + $0x56c] ss:$16 sps:$4 sm:$0xff]   ;;  %v4533_v55 = vld [vmem:[#allocation7 + $0x5a4] ss:$16 sps:$4 sm:$0xff]   ;;  %v257_v19 = vrot.slane %v5046_v13, %v256_v50 }
 0x1bc   :  { %2751 = vmatpush1.bf16.msra.mxu0 %v4447_v45  ;;  %2915 = vmatpush1.bf16.msra.mxu1 %v4450_v46  ;;  %v1116_v58 = vpack.c.bf16 %v1108_v57, %v1108_v57  ;;  %v4516_v45 = vld [vmem:[#allocation7 + $0x548] ss:$16 sps:$4 sm:$0xff]   ;;  %v4521_v46 = vld [vmem:[#allocation7 + $0x564] ss:$16 sps:$4 sm:$0xff]   ;;  %v4519_v49 = vld [vmem:[#allocation7 + $0x560] ss:$16 sps:$4 sm:$0xff]  }
 0x1bd   :  { %2761 = vmatprep.subr.bf16.mxu0 %v4455_v51  ;;  %2925 = vmatprep.subr.bf16.mxu1 %v4458_v56  ;;  %v4522_v51 = vld [vmem:[#allocation7 + $0x568] ss:$16 sps:$4 sm:$0xff]   ;;  %v4530_v53 = vld [vmem:[#allocation7 + $0x58c] ss:$16 sps:$4 sm:$0xff]   ;;  %v4525_v54 = vld [vmem:[#allocation7 + $0x580] ss:$16 sps:$4 sm:$0xff]  }
 0x1be   :  { %2752 = vmatprep.mubr.bf16.mxu0 %v1116_v58  ;;  %2916 = vmatprep.mubr.bf16.mxu1 %v1116_v58  ;;  %v4528_v56 = vld [vmem:[#allocation7 + $0x588] ss:$16 sps:$4 sm:$0xff]   ;;  %v4536_v57 = vld [vmem:[#allocation7 + $0x5ac] ss:$16 sps:$4 sm:$0xff]   ;;  %v268_v58 = vsub.s32 7, %v5038_v11 }
 0x1bf   :  { %2753 = vmatmul.mubr.bf16.vlgmr.msra.gmra.mrb[4].mxu0 %v1115_v61  ;;  %2917 = vmatmul.mubr.bf16.vlgmr.msra.gmra.mrb[12].mxu1 %v1115_v61  ;;  %v4539_v61 = vld [vmem:[#allocation7 + $0x5c4] ss:$16 sps:$4 sm:$0xff]  }
 0x1c0   :  { %2762 = vmatpush1.bf16.msra.mxu0 %v4453_v59  ;;  %2926 = vmatpush1.bf16.msra.mxu1 %v4456_v60  ;;  %v4531_v59 = vld [vmem:[#allocation7 + $0x5a0] ss:$16 sps:$4 sm:$0xff]   ;;  %v4534_v60 = vld [vmem:[#allocation7 + $0x5a8] ss:$16 sps:$4 sm:$0xff]   ;;  %v4593_v50 = vld [vmem:[#allocation7 + $0x6e4] ss:$16 sps:$4 sm:$0xff]  }
 0x1c1   :  { %2763 = vmatprep.subr.bf16.mxu0 %v4461_v62  ;;  %2927 = vmatprep.subr.bf16.mxu1 %v4464_v63  ;;  %v4542_v62 = vld [vmem:[#allocation7 + $0x5cc] ss:$16 sps:$4 sm:$0xff]   ;;  %v1042_v63 = vadd.f32 %v5055_v47, %v257_v19  ;;  %v4546_v47 = vld [vmem:[#allocation7 + $0x5e8] ss:$16 sps:$4 sm:$0xff]  }
 0x1c2   :  { %2793 = vmatprep.mubr.bf16.mxu0 %v1118_v0  ;;  %2957 = vmatprep.mubr.bf16.mxu1 %v1118_v0  ;;  %v269_v0 = vrot.slane %v5046_v13, %v268_v58  ;;  %v4602_v19 = vld [vmem:[#allocation7 + $0x70c] ss:$16 sps:$4 sm:$0xff]   ;;  %v4597_v58 = vld [vmem:[#allocation7 + $0x700] ss:$16 sps:$4 sm:$0xff]  }
 0x1c3   :  { %vm1093_vm5 = vcmp.gt.f32.partialorder %v1042_v63, 0.0 }
 0x1c4   :  { %2764 = vmatpush1.bf16.msra.mxu0 %v4459_v1  ;;  %2928 = vmatpush1.bf16.msra.mxu1 %v4462_v2  ;;  %v4537_v1 = vld [vmem:[#allocation7 + $0x5c0] ss:$16 sps:$4 sm:$0xff]   ;;  %v4540_v2 = vld [vmem:[#allocation7 + $0x5c8] ss:$16 sps:$4 sm:$0xff]  }
 0x1c5   :  { %2765 = vmatprep.subr.bf16.mxu0 %v4467_v18  ;;  %2929 = vmatprep.subr.bf16.mxu1 %v4470_v3  ;;  %v4545_v18 = vld [vmem:[#allocation7 + $0x5e4] ss:$16 sps:$4 sm:$0xff]   ;;  %v4548_v3 = vld [vmem:[#allocation7 + $0x5ec] ss:$16 sps:$4 sm:$0xff]  }
 0x1c8   :  { %2766 = vmatpush1.bf16.msra.mxu0 %v4465_v4  ;;  %2930 = vmatpush1.bf16.msra.mxu1 %v4468_v5  ;;  %v1101_v5 = vmul.f32 0.2, %v1042_v63 }
 0x1c9   :  { %2767 = vmatprep.subr.bf16.mxu0 %v4473_v6  ;;  %2931 = vmatprep.subr.bf16.mxu1 %v4476_v7  ;;  %v4543_v7 = vld [vmem:[#allocation7 + $0x5e0] ss:$16 sps:$4 sm:$0xff]  }
 0x1cc   :  { %2768 = vmatpush1.bf16.msra.mxu0 %v4471_v8  ;;  %2932 = vmatpush1.bf16.msra.mxu1 %v4474_v9 }
 0x1cd   :  { %2769 = vmatprep.subr.bf16.mxu0 %v4479_v10  ;;  %2933 = vmatprep.subr.bf16.mxu1 %v4482_v15  ;;  %v4551_v10 = vld [vmem:[#allocation7 + $0x604] ss:$16 sps:$4 sm:$0xff]  }
 0x1d0   :  { %2770 = vmatpush1.bf16.msra.mxu0 %v4477_v16  ;;  %2934 = vmatpush1.bf16.msra.mxu1 %v4480_v17  ;;  %v4554_v16 = vld [vmem:[#allocation7 + $0x60c] ss:$16 sps:$4 sm:$0xff]  }
 0x1d1   :  { %2771 = vmatprep.subr.bf16.mxu0 %v4485_v20  ;;  %2935 = vmatprep.subr.bf16.mxu1 %v4488_v21  ;;  %v1109_v20 = vsel %vm1093_vm5, %v1042_v63, %v1101_v5  ;;  %v4606_v63 = vld [vmem:[#allocation7 + $0x728] ss:$16 sps:$4 sm:$0xff]   ;;  %v4620_v5 = vld [vmem:[#allocation7 + $0x76c] ss:$16 sps:$4 sm:$0xff]  }
 0x1d4   :  { %2772 = vmatpush1.bf16.msra.mxu0 %v4483_v22  ;;  %2936 = vmatpush1.bf16.msra.mxu1 %v4486_v23  ;;  %v4549_v22 = vld [vmem:[#allocation7 + $0x600] ss:$16 sps:$4 sm:$0xff]   ;;  %v4552_v23 = vld [vmem:[#allocation7 + $0x608] ss:$16 sps:$4 sm:$0xff]  }
 0x1d5   :  { %2773 = vmatprep.subr.bf16.mxu0 %v4491_v24  ;;  %2937 = vmatprep.subr.bf16.mxu1 %v4494_v25  ;;  %v1117_v24 = vpack.c.bf16 %v1109_v20, %v1109_v20  ;;  %v4557_v25 = vld [vmem:[#allocation7 + $0x624] ss:$16 sps:$4 sm:$0xff]  }
 0x1d8   :  { %2774 = vmatpush1.bf16.msra.mxu0 %v4489_v26  ;;  %2938 = vmatpush1.bf16.msra.mxu1 %v4492_v27  ;;  %v4560_v26 = vld [vmem:[#allocation7 + $0x62c] ss:$16 sps:$4 sm:$0xff]  }
 0x1d9   :  { %2775 = vmatprep.subr.bf16.mxu0 %v4497_v30  ;;  %2939 = vmatprep.subr.bf16.mxu1 %v4500_v31  ;;  %v4555_v30 = vld [vmem:[#allocation7 + $0x620] ss:$16 sps:$4 sm:$0xff]   ;;  %v4558_v31 = vld [vmem:[#allocation7 + $0x628] ss:$16 sps:$4 sm:$0xff]  }
 0x1dc   :  { %2776 = vmatpush1.bf16.msra.mxu0 %v4495_v32  ;;  %2940 = vmatpush1.bf16.msra.mxu1 %v4498_v33  ;;  %v4563_v32 = vld [vmem:[#allocation7 + $0x644] ss:$16 sps:$4 sm:$0xff]   ;;  %v4566_v33 = vld [vmem:[#allocation7 + $0x64c] ss:$16 sps:$4 sm:$0xff]  }
 0x1dd   :  { %2777 = vmatprep.subr.bf16.mxu0 %v4503_v34  ;;  %2941 = vmatprep.subr.bf16.mxu1 %v4506_v35  ;;  %v4561_v34 = vld [vmem:[#allocation7 + $0x640] ss:$16 sps:$4 sm:$0xff]   ;;  %v4564_v35 = vld [vmem:[#allocation7 + $0x648] ss:$16 sps:$4 sm:$0xff]  }
 0x1e0   :  { %2778 = vmatpush1.bf16.msra.mxu0 %v4501_v36  ;;  %2942 = vmatpush1.bf16.msra.mxu1 %v4504_v37  ;;  %v4569_v36 = vld [vmem:[#allocation7 + $0x664] ss:$16 sps:$4 sm:$0xff]   ;;  %v4572_v37 = vld [vmem:[#allocation7 + $0x66c] ss:$16 sps:$4 sm:$0xff]  }
 0x1e1   :  { %2779 = vmatprep.subr.bf16.mxu0 %v4509_v38  ;;  %2943 = vmatprep.subr.bf16.mxu1 %v4512_v39  ;;  %v4567_v38 = vld [vmem:[#allocation7 + $0x660] ss:$16 sps:$4 sm:$0xff]   ;;  %v4570_v39 = vld [vmem:[#allocation7 + $0x668] ss:$16 sps:$4 sm:$0xff]  }
 0x1e4   :  { %2780 = vmatpush1.bf16.msra.mxu0 %v4507_v40  ;;  %2944 = vmatpush1.bf16.msra.mxu1 %v4510_v41  ;;  %v4575_v40 = vld [vmem:[#allocation7 + $0x684] ss:$16 sps:$4 sm:$0xff]   ;;  %v4578_v41 = vld [vmem:[#allocation7 + $0x68c] ss:$16 sps:$4 sm:$0xff]  }
 0x1e5   :  { %2781 = vmatprep.subr.bf16.mxu0 %v4515_v42  ;;  %2945 = vmatprep.subr.bf16.mxu1 %v4518_v43  ;;  %v4573_v42 = vld [vmem:[#allocation7 + $0x680] ss:$16 sps:$4 sm:$0xff]   ;;  %v4576_v43 = vld [vmem:[#allocation7 + $0x688] ss:$16 sps:$4 sm:$0xff]  }
 0x1e8   :  { %2782 = vmatpush1.bf16.msra.mxu0 %v4513_v44  ;;  %2946 = vmatpush1.bf16.msra.mxu1 %v4516_v45  ;;  %v4581_v44 = vld [vmem:[#allocation7 + $0x6a4] ss:$16 sps:$4 sm:$0xff]   ;;  %v4584_v45 = vld [vmem:[#allocation7 + $0x6ac] ss:$16 sps:$4 sm:$0xff]  }
 0x1e9   :  { %2783 = vmatprep.subr.bf16.mxu0 %v4521_v46  ;;  %2947 = vmatprep.subr.bf16.mxu1 %v4524_v48  ;;  %v4579_v46 = vld [vmem:[#allocation7 + $0x6a0] ss:$16 sps:$4 sm:$0xff]   ;;  %v4582_v48 = vld [vmem:[#allocation7 + $0x6a8] ss:$16 sps:$4 sm:$0xff]  }
 0x1ec   :  { %2784 = vmatpush1.bf16.msra.mxu0 %v4519_v49  ;;  %2948 = vmatpush1.bf16.msra.mxu1 %v4522_v51  ;;  %v4587_v49 = vld [vmem:[#allocation7 + $0x6c4] ss:$16 sps:$4 sm:$0xff]   ;;  %v4590_v51 = vld [vmem:[#allocation7 + $0x6cc] ss:$16 sps:$4 sm:$0xff]  }
 0x1ed   :  { %2785 = vmatprep.subr.bf16.mxu0 %v4527_v52  ;;  %2949 = vmatprep.subr.bf16.mxu1 %v4530_v53  ;;  %v4585_v52 = vld [vmem:[#allocation7 + $0x6c0] ss:$16 sps:$4 sm:$0xff]   ;;  %v4588_v53 = vld [vmem:[#allocation7 + $0x6c8] ss:$16 sps:$4 sm:$0xff]  }
 0x1f0   :  { %2786 = vmatpush1.bf16.msra.mxu0 %v4525_v54  ;;  %2950 = vmatpush1.bf16.msra.mxu1 %v4528_v56  ;;  %v4596_v54 = vld [vmem:[#allocation7 + $0x6ec] ss:$16 sps:$4 sm:$0xff]   ;;  %v4591_v56 = vld [vmem:[#allocation7 + $0x6e0] ss:$16 sps:$4 sm:$0xff]  }
 0x1f1   :  { %2787 = vmatprep.subr.bf16.mxu0 %v4533_v55  ;;  %2951 = vmatprep.subr.bf16.mxu1 %v4536_v57  ;;  %v4594_v55 = vld [vmem:[#allocation7 + $0x6e8] ss:$16 sps:$4 sm:$0xff]   ;;  %v4599_v57 = vld [vmem:[#allocation7 + $0x704] ss:$16 sps:$4 sm:$0xff]  }
 0x1f4   :  { %2788 = vmatpush1.bf16.msra.mxu0 %v4531_v59  ;;  %2952 = vmatpush1.bf16.msra.mxu1 %v4534_v60  ;;  %v4600_v59 = vld [vmem:[#allocation7 + $0x708] ss:$16 sps:$4 sm:$0xff]   ;;  %v4605_v60 = vld [vmem:[#allocation7 + $0x724] ss:$16 sps:$4 sm:$0xff]  }
 0x1f5   :  { %2789 = vmatprep.subr.bf16.mxu0 %v4539_v61  ;;  %2953 = vmatprep.subr.bf16.mxu1 %v4542_v62  ;;  %v5075_v4 = vpop.f32.mrb[8].mxu1  ;;  %v4608_v61 = vld [vmem:[#allocation7 + $0x72c] ss:$16 sps:$4 sm:$0xff]   ;;  %v4603_v62 = vld [vmem:[#allocation7 + $0x720] ss:$16 sps:$4 sm:$0xff]  }
 0x1f6   :  { %v1084_v6 = vpop.f32.mrb[9].mxu1 }
 0x1f7   :  { %v1085_v8 = vadd.f32 %v1084_v6, %v269_v0  ;;  %v1086_v9 = vpop.f32.mrb[10].mxu1  ;;  %v4611_v0 = vld [vmem:[#allocation7 + $0x744] ss:$16 sps:$4 sm:$0xff]   ;;  %v4615_v6 = vld [vmem:[#allocation7 + $0x760] ss:$16 sps:$4 sm:$0xff]  }
 0x1f8   :  { %2790 = vmatpush1.bf16.msra.mxu0 %v4537_v1  ;;  %2954 = vmatpush1.bf16.msra.mxu1 %v4540_v2  ;;  %v1087_v15 = vpop.f32.mrb[11].mxu1  ;;  %v4614_v1 = vld [vmem:[#allocation7 + $0x74c] ss:$16 sps:$4 sm:$0xff]   ;;  %v4609_v2 = vld [vmem:[#allocation7 + $0x740] ss:$16 sps:$4 sm:$0xff]  }
 0x1f9   :  { %2791 = vmatprep.subr.bf16.mxu0 %v4545_v18  ;;  %2955 = vmatprep.subr.bf16.mxu1 %v4548_v3  ;;  %vm1096_vm6 = vcmp.gt.f32.partialorder %v1085_v8, 0.0  ;;  %v1104_v17 = vmul.f32 0.2, %v1085_v8  ;;  %v4612_v18 = vld [vmem:[#allocation7 + $0x748] ss:$16 sps:$4 sm:$0xff]  }
 0x1fa   :  { %v4617_v3 = vld [vmem:[#allocation7 + $0x764] ss:$16 sps:$4 sm:$0xff]   ;;  %v4626_v9 = vld [vmem:[#allocation7 + $0x78c] ss:$16 sps:$4 sm:$0xff]   ;;  %v4624_v15 = vld [vmem:[#allocation7 + $0x788] ss:$16 sps:$4 sm:$0xff]  }
 0x1fb   :  { %v1112_v21 = vsel %vm1096_vm6, %v1085_v8, %v1104_v17  ;;  %v4623_v8 = vld [vmem:[#allocation7 + $0x784] ss:$16 sps:$4 sm:$0xff]   ;;  %v4632_v17 = vld [vmem:[#allocation7 + $0x7ac] ss:$16 sps:$4 sm:$0xff]  }
 0x1fc   :  { %2792 = vmatpush1.bf16.msra.mxu0 %v4543_v7  ;;  %2956 = vmatpush1.bf16.msra.mxu1 %v4546_v47  ;;  %v1120_v27 = vpack.c.bf16 %v1112_v21, %v1112_v21  ;;  %v4618_v7 = vld [vmem:[#allocation7 + $0x768] ss:$16 sps:$4 sm:$0xff]   ;;  %v264_v47 = vsub.s32 6, %v5038_v11  ;;  %v4627_v21 = vld [vmem:[#allocation7 + $0x7a0] ss:$16 sps:$4 sm:$0xff]  }
 0x1fd   :  { %2802 = vmatprep.subr.bf16.mxu0 %v4551_v10  ;;  %2966 = vmatprep.subr.bf16.mxu1 %v4554_v16  ;;  %v4621_v10 = vld [vmem:[#allocation7 + $0x780] ss:$16 sps:$4 sm:$0xff]   ;;  %v4629_v16 = vld [vmem:[#allocation7 + $0x7a4] ss:$16 sps:$4 sm:$0xff]  }
 0x1fe   :  { %v265_v20 = vrot.slane %v5046_v13, %v264_v47  ;;  %v4639_v13 = vld [vmem:[#allocation7 + $0x7e0] ss:$16 sps:$4 sm:$0xff]   ;;  %v4747_v47 = vld [vmem:[#allocation10 + $0x58] sm:$0xff]  }
 0x1ff   :  { %2794 = vmatmul.mubr.bf16.vlgmr.msra.gmra.mrb[4].mxu0 %v1117_v24  ;;  %2958 = vmatmul.mubr.bf16.vlgmr.msra.gmra.mrb[12].mxu1 %v1117_v24  ;;  %v4638_v24 = vld [vmem:[#allocation7 + $0x7cc] ss:$16 sps:$4 sm:$0xff]  }
 0x200   :  { %2803 = vmatpush1.bf16.msra.mxu0 %v4549_v22  ;;  %2967 = vmatpush1.bf16.msra.mxu1 %v4552_v23  ;;  %v4630_v22 = vld [vmem:[#allocation7 + $0x7a8] ss:$16 sps:$4 sm:$0xff]   ;;  %v4635_v23 = vld [vmem:[#allocation7 + $0x7c4] ss:$16 sps:$4 sm:$0xff]  }
 0x201   :  { %2804 = vmatprep.subr.bf16.mxu0 %v4557_v25  ;;  %2968 = vmatprep.subr.bf16.mxu1 %v4560_v26  ;;  %v1083_v25 = vadd.f32 %v5075_v4, %v265_v20  ;;  %v4633_v26 = vld [vmem:[#allocation7 + $0x7c0] ss:$16 sps:$4 sm:$0xff]   ;;  %v4752_v20 = vld [vmem:[#allocation10 + $0x28] sm:$0xff]  }
 0x202   :  { %2834 = vmatprep.mubr.bf16.mxu0 %v1120_v27  ;;  %2998 = vmatprep.mubr.bf16.mxu1 %v1120_v27  ;;  %v4636_v27 = vld [vmem:[#allocation7 + $0x7c8] ss:$16 sps:$4 sm:$0xff]  }
 0x203   :  { %vm1095_vm7 = vcmp.gt.f32.partialorder %v1083_v25, 0.0  ;;  %v4645_v4 = vld [vmem:[#allocation8] ss:$8 sps:$4 sm:$0xff]  }
 0x204   :  { %2805 = vmatpush1.bf16.msra.mxu0 %v4555_v30  ;;  %2969 = vmatpush1.bf16.msra.mxu1 %v4558_v31  ;;  %v4641_v30 = vld [vmem:[#allocation7 + $0x7e4] ss:$16 sps:$4 sm:$0xff]   ;;  %v4644_v31 = vld [vmem:[#allocation7 + $0x7ec] ss:$16 sps:$4 sm:$0xff]  }
 0x205   :  { %2806 = vmatprep.subr.bf16.mxu0 %v4563_v32  ;;  %2970 = vmatprep.subr.bf16.mxu1 %v4566_v33  ;;  %v1103_v32 = vmul.f32 0.2, %v1083_v25  ;;  %v4642_v33 = vld [vmem:[#allocation7 + $0x7e8] ss:$16 sps:$4 sm:$0xff]  }
 0x208   :  { %2807 = vmatpush1.bf16.msra.mxu0 %v4561_v34  ;;  %2971 = vmatpush1.bf16.msra.mxu1 %v4564_v35  ;;  %v4647_v34 = vld [vmem:[#allocation8 + $0x4] ss:$8 sps:$4 sm:$0xff]   ;;  %v1111_v35 = vsel %vm1095_vm7, %v1083_v25, %v1103_v32 }
 0x209   :  { %2808 = vmatprep.subr.bf16.mxu0 %v4569_v36  ;;  %2972 = vmatprep.subr.bf16.mxu1 %v4572_v37  ;;  %v1119_v36 = vpack.c.bf16 %v1111_v35, %v1111_v35  ;;  %v4650_v37 = vld [vmem:[#allocation8 + $0x14] ss:$8 sps:$4 sm:$0xff]  }
 0x20c   :  { %2809 = vmatpush1.bf16.msra.mxu0 %v4567_v38  ;;  %2973 = vmatpush1.bf16.msra.mxu1 %v4570_v39  ;;  %v4648_v38 = vld [vmem:[#allocation8 + $0x10] ss:$8 sps:$4 sm:$0xff]   ;;  %v4653_v39 = vld [vmem:[#allocation8 + $0x24] ss:$8 sps:$4 sm:$0xff]  }
 0x20d   :  { %2810 = vmatprep.subr.bf16.mxu0 %v4575_v40  ;;  %2974 = vmatprep.subr.bf16.mxu1 %v4578_v41  ;;  %v4651_v40 = vld [vmem:[#allocation8 + $0x20] ss:$8 sps:$4 sm:$0xff]   ;;  %v4656_v41 = vld [vmem:[#allocation8 + $0x34] ss:$8 sps:$4 sm:$0xff]  }
 0x210   :  { %2811 = vmatpush1.bf16.msra.mxu0 %v4573_v42  ;;  %2975 = vmatpush1.bf16.msra.mxu1 %v4576_v43  ;;  %v4654_v42 = vld [vmem:[#allocation8 + $0x30] ss:$8 sps:$4 sm:$0xff]   ;;  %v4659_v43 = vld [vmem:[#allocation8 + $0x44] ss:$8 sps:$4 sm:$0xff]  }
 0x211   :  { %2812 = vmatprep.subr.bf16.mxu0 %v4581_v44  ;;  %2976 = vmatprep.subr.bf16.mxu1 %v4584_v45  ;;  %v4657_v44 = vld [vmem:[#allocation8 + $0x40] ss:$8 sps:$4 sm:$0xff]   ;;  %v4662_v45 = vld [vmem:[#allocation8 + $0x54] ss:$8 sps:$4 sm:$0xff]  }
 0x214   :  { %2813 = vmatpush1.bf16.msra.mxu0 %v4579_v46  ;;  %2977 = vmatpush1.bf16.msra.mxu1 %v4582_v48  ;;  %v4660_v46 = vld [vmem:[#allocation8 + $0x50] ss:$8 sps:$4 sm:$0xff]   ;;  %v4665_v48 = vld [vmem:[#allocation8 + $0x64] ss:$8 sps:$4 sm:$0xff]  }
 0x215   :  { %2814 = vmatprep.subr.bf16.mxu0 %v4587_v49  ;;  %2978 = vmatprep.subr.bf16.mxu1 %v4590_v51  ;;  %v4663_v49 = vld [vmem:[#allocation8 + $0x60] ss:$8 sps:$4 sm:$0xff]   ;;  %v4668_v51 = vld [vmem:[#allocation8 + $0x74] ss:$8 sps:$4 sm:$0xff]  }
 0x218   :  { %2815 = vmatpush1.bf16.msra.mxu0 %v4585_v52  ;;  %2979 = vmatpush1.bf16.msra.mxu1 %v4588_v53  ;;  %v4666_v52 = vld [vmem:[#allocation8 + $0x70] ss:$8 sps:$4 sm:$0xff]   ;;  %v4671_v53 = vld [vmem:[#allocation8 + $0x84] ss:$8 sps:$4 sm:$0xff]  }
 0x219   :  { %2816 = vmatprep.subr.bf16.mxu0 %v4593_v50  ;;  %2980 = vmatprep.subr.bf16.mxu1 %v4596_v54  ;;  %v4669_v50 = vld [vmem:[#allocation8 + $0x80] ss:$8 sps:$4 sm:$0xff]   ;;  %v4674_v54 = vld [vmem:[#allocation8 + $0x94] ss:$8 sps:$4 sm:$0xff]  }
 0x21c   :  { %2817 = vmatpush1.bf16.msra.mxu0 %v4591_v56  ;;  %2981 = vmatpush1.bf16.msra.mxu1 %v4594_v55  ;;  %v4672_v56 = vld [vmem:[#allocation8 + $0x90] ss:$8 sps:$4 sm:$0xff]   ;;  %v4677_v55 = vld [vmem:[#allocation8 + $0xa4] ss:$8 sps:$4 sm:$0xff]  }
 0x21d   :  { %2818 = vmatprep.subr.bf16.mxu0 %v4599_v57  ;;  %2982 = vmatprep.subr.bf16.mxu1 %v4602_v19  ;;  %v4675_v57 = vld [vmem:[#allocation8 + $0xa0] ss:$8 sps:$4 sm:$0xff]   ;;  %v4680_v19 = vld [vmem:[#allocation8 + $0xb4] ss:$8 sps:$4 sm:$0xff]  }
 0x220   :  { %2819 = vmatpush1.bf16.msra.mxu0 %v4597_v58  ;;  %2983 = vmatpush1.bf16.msra.mxu1 %v4600_v59  ;;  %v4678_v58 = vld [vmem:[#allocation8 + $0xb0] ss:$8 sps:$4 sm:$0xff]   ;;  %v4683_v59 = vld [vmem:[#allocation8 + $0xc4] ss:$8 sps:$4 sm:$0xff]  }
 0x221   :  { %2820 = vmatprep.subr.bf16.mxu0 %v4605_v60  ;;  %2984 = vmatprep.subr.bf16.mxu1 %v4608_v61  ;;  %v4681_v60 = vld [vmem:[#allocation8 + $0xc0] ss:$8 sps:$4 sm:$0xff]   ;;  %v4686_v61 = vld [vmem:[#allocation8 + $0xd4] ss:$8 sps:$4 sm:$0xff]  }
 0x224   :  { %2821 = vmatpush1.bf16.msra.mxu0 %v4603_v62  ;;  %2985 = vmatpush1.bf16.msra.mxu1 %v4606_v63  ;;  %v4684_v62 = vld [vmem:[#allocation8 + $0xd0] ss:$8 sps:$4 sm:$0xff]   ;;  %v4689_v63 = vld [vmem:[#allocation8 + $0xe4] ss:$8 sps:$4 sm:$0xff]  }
 0x225   :  { %2822 = vmatprep.subr.bf16.mxu0 %v4611_v0  ;;  %2986 = vmatprep.subr.bf16.mxu1 %v4614_v1  ;;  %v4687_v0 = vld [vmem:[#allocation8 + $0xe0] ss:$8 sps:$4 sm:$0xff]   ;;  %v4692_v1 = vld [vmem:[#allocation8 + $0xf4] ss:$8 sps:$4 sm:$0xff]  }
 0x228   :  { %2823 = vmatpush1.bf16.msra.mxu0 %v4609_v2  ;;  %2987 = vmatpush1.bf16.msra.mxu1 %v4612_v18  ;;  %v4690_v2 = vld [vmem:[#allocation8 + $0xf0] ss:$8 sps:$4 sm:$0xff]   ;;  %v4695_v18 = vld [vmem:[#allocation8 + $0x104] ss:$8 sps:$4 sm:$0xff]  }
 0x229   :  { %2824 = vmatprep.subr.bf16.mxu0 %v4617_v3  ;;  %2988 = vmatprep.subr.bf16.mxu1 %v4620_v5  ;;  %v4741_v3 = vld [vmem:[#allocation10 + $0x40] sm:$0xff]  }
 0x22a   :  { %v4742_v5 = vld [vmem:[#allocation10] sm:$0xff]  }
 0x22c   :  { %2825 = vmatpush1.bf16.msra.mxu0 %v4615_v6  ;;  %2989 = vmatpush1.bf16.msra.mxu1 %v4618_v7  ;;  %v4743_v6 = vld [vmem:[#allocation10 + $0x48] sm:$0xff]  }
 0x22d   :  { %2826 = vmatprep.subr.bf16.mxu0 %v4623_v8  ;;  %2990 = vmatprep.subr.bf16.mxu1 %v4626_v9  ;;  %v4744_v7 = vld [vmem:[#allocation10 + $0x8] sm:$0xff]   ;;  %v4745_v8 = vld [vmem:[#allocation10 + $0x50] sm:$0xff]  }
 0x22e   :  { %v4746_v9 = vld [vmem:[#allocation10 + $0x10] sm:$0xff]  }
 0x230   :  { %2827 = vmatpush1.bf16.msra.mxu0 %v4621_v10  ;;  %2991 = vmatpush1.bf16.msra.mxu1 %v4624_v15  ;;  %v4748_v10 = vld [vmem:[#allocation10 + $0x18] sm:$0xff]   ;;  %v4749_v15 = vld [vmem:[#allocation10 + $0x60] sm:$0xff]  }
 0x231   :  { %2828 = vmatprep.subr.bf16.mxu0 %v4629_v16  ;;  %2992 = vmatprep.subr.bf16.mxu1 %v4632_v17  ;;  %v4750_v16 = vld [vmem:[#allocation10 + $0x20] sm:$0xff]   ;;  %v4751_v17 = vld [vmem:[#allocation10 + $0x68] sm:$0xff]  }
 0x234   :  { %2829 = vmatpush1.bf16.msra.mxu0 %v4627_v21  ;;  %2993 = vmatpush1.bf16.msra.mxu1 %v4630_v22  ;;  %v5083_v21 = vld [vmem:[%s5116_s4] sm:$0xf] }
 0x235   :  { %2830 = vmatprep.subr.bf16.mxu0 %v4635_v23  ;;  %2994 = vmatprep.subr.bf16.mxu1 %v4638_v24  ;;  %v1382_v22 = vrot.slane %v5083_v21, %v5041_v12  ;;  %v1386_v23 = vrot.slane %v5083_v21, %v5049_v14  ;;  %v1394_v24 = vrot.slane %v5083_v21, %v252_v29 }
 0x238   :  { %2831 = vmatpush1.bf16.msra.mxu0 %v4633_v26  ;;  %2995 = vmatpush1.bf16.msra.mxu1 %v4636_v27 }
 0x239   :  { %2832 = vmatprep.subr.bf16.mxu0 %v4641_v30  ;;  %2996 = vmatprep.subr.bf16.mxu1 %v4644_v31 }
 0x23c   :  { %2833 = vmatpush1.bf16.msra.mxu0 %v4639_v13  ;;  %2997 = vmatpush1.bf16.msra.mxu1 %v4642_v33 }
 0x23d   :  { %3419 = vmatprep.subr.bf16.mxu0 %v4647_v34  ;;  %4190 = vmatprep.subr.bf16.mxu1 %v4741_v3  ;;  %v4729_v3 = vld [vmem:[#allocation8 + $0x1c0] ss:$8 sps:$4 sm:$0xff]  }
 0x23f   :  { %2835 = vmatmul.mubr.bf16.vlgmr.msra.gmra.mrb[4].mxu0 %v1119_v36  ;;  %2999 = vmatmul.mubr.bf16.vlgmr.msra.gmra.mrb[12].mxu1 %v1119_v36 }
 0x240   :  { %3420 = vmatpush1.bf16.msra.mxu0 %v4645_v4  ;;  %4191 = vmatpush3.bf16.msra.mxu1 %v4742_v5  ;;  %v4734_v5 = vld [vmem:[#allocation8 + $0x1d4] ss:$8 sps:$4 sm:$0xff]  }
 0x241   :  { %3421 = vmatprep.subr.bf16.mxu0 %v4650_v37  ;;  %4192 = vmatprep.subr.bf16.mxu1 %v4743_v6  ;;  %v1390_v6 = vrot.slane %v5083_v21, %v248_v28  ;;  %v4753_v28 = vld [vmem:[#allocation10 + $0x70] sm:$0xff]   ;;  %v4755_v21 = vld [vmem:[#allocation10 + $0x78] sm:$0xff]  }
 0x244   :  { %3422 = vmatpush1.bf16.msra.mxu0 %v4648_v38  ;;  %4193 = vmatpush3.bf16.msra.mxu1 %v4744_v7  ;;  %v4732_v7 = vld [vmem:[#allocation8 + $0x1d0] ss:$8 sps:$4 sm:$0xff]  }
 0x245   :  { %3423 = vmatprep.subr.bf16.mxu0 %v4653_v39  ;;  %4194 = vmatprep.subr.bf16.mxu1 %v4745_v8  ;;  %v4737_v8 = vld [vmem:[#allocation8 + $0x1e4] ss:$8 sps:$4 sm:$0xff]  }
 0x248   :  { %3424 = vmatpush1.bf16.msra.mxu0 %v4651_v40  ;;  %4195 = vmatpush3.bf16.msra.mxu1 %v4746_v9 }
 0x249   :  { %3425 = vmatprep.subr.bf16.mxu0 %v4656_v41  ;;  %4196 = vmatprep.subr.bf16.mxu1 %v4747_v47  ;;  %v4735_v47 = vld [vmem:[#allocation8 + $0x1e0] ss:$8 sps:$4 sm:$0xff]  }
 0x24c   :  { %3426 = vmatpush1.bf16.msra.mxu0 %v4654_v42  ;;  %4197 = vmatpush3.bf16.msra.mxu1 %v4748_v10  ;;  %v4693_v42 = vld [vmem:[#allocation8 + $0x100] ss:$8 sps:$4 sm:$0xff]   ;;  %v4740_v10 = vld [vmem:[#allocation8 + $0x1f4] ss:$8 sps:$4 sm:$0xff]  }
 0x24d   :  { %3427 = vmatprep.subr.bf16.mxu0 %v4659_v43  ;;  %4198 = vmatprep.subr.bf16.mxu1 %v4749_v15 }
 0x250   :  { %3428 = vmatpush1.bf16.msra.mxu0 %v4657_v44  ;;  %4199 = vmatpush3.bf16.msra.mxu1 %v4750_v16  ;;  %v4698_v44 = vld [vmem:[#allocation8 + $0x114] ss:$8 sps:$4 sm:$0xff]   ;;  %v4738_v16 = vld [vmem:[#allocation8 + $0x1f0] ss:$8 sps:$4 sm:$0xff]  }
 0x251   :  { %3429 = vmatprep.subr.bf16.mxu0 %v4662_v45  ;;  %4200 = vmatprep.subr.bf16.mxu1 %v4751_v17 }
 0x254   :  { %3430 = vmatpush1.bf16.msra.mxu0 %v4660_v46  ;;  %4201 = vmatpush3.bf16.msra.mxu1 %v4752_v20  ;;  %v4696_v46 = vld [vmem:[#allocation8 + $0x110] ss:$8 sps:$4 sm:$0xff]  }
 0x255   :  { %3431 = vmatprep.subr.bf16.mxu0 %v4665_v48  ;;  %v4701_v48 = vld [vmem:[#allocation8 + $0x124] ss:$8 sps:$4 sm:$0xff]   ;;  %v4754_v20 = vld [vmem:[#allocation10 + $0x30] sm:$0xff]   ;;  %4202 = vmatprep.subr.bf16.mxu1 %v4753_v28 }
 0x258   :  { %3432 = vmatpush1.bf16.msra.mxu0 %v4663_v49  ;;  %v4699_v49 = vld [vmem:[#allocation8 + $0x120] ss:$8 sps:$4 sm:$0xff]   ;;  %4203 = vmatpush3.bf16.msra.mxu1 %v4754_v20 }
 0x259   :  { %3433 = vmatprep.subr.bf16.mxu0 %v4668_v51  ;;  %v4704_v51 = vld [vmem:[#allocation8 + $0x134] ss:$8 sps:$4 sm:$0xff]   ;;  %4204 = vmatprep.subr.bf16.mxu1 %v4755_v21 }
 0x25c   :  { %3434 = vmatpush1.bf16.msra.mxu0 %v4666_v52  ;;  %v4702_v52 = vld [vmem:[#allocation8 + $0x130] ss:$8 sps:$4 sm:$0xff]  }
 0x25d   :  { %3435 = vmatprep.subr.bf16.mxu0 %v4671_v53  ;;  %v4707_v53 = vld [vmem:[#allocation8 + $0x144] ss:$8 sps:$4 sm:$0xff]  }
 0x260   :  { %3436 = vmatpush1.bf16.msra.mxu0 %v4669_v50  ;;  %v4705_v50 = vld [vmem:[#allocation8 + $0x140] ss:$8 sps:$4 sm:$0xff]  }
 0x261   :  { %3437 = vmatprep.subr.bf16.mxu0 %v4674_v54  ;;  %v4710_v54 = vld [vmem:[#allocation8 + $0x154] ss:$8 sps:$4 sm:$0xff]  }
 0x264   :  { %3438 = vmatpush1.bf16.msra.mxu0 %v4672_v56  ;;  %v4708_v56 = vld [vmem:[#allocation8 + $0x150] ss:$8 sps:$4 sm:$0xff]  }
 0x265   :  { %3439 = vmatprep.subr.bf16.mxu0 %v4677_v55  ;;  %v4713_v55 = vld [vmem:[#allocation8 + $0x164] ss:$8 sps:$4 sm:$0xff]  }
 0x268   :  { %3440 = vmatpush1.bf16.msra.mxu0 %v4675_v57  ;;  %v4711_v57 = vld [vmem:[#allocation8 + $0x160] ss:$8 sps:$4 sm:$0xff]  }
 0x269   :  { %3441 = vmatprep.subr.bf16.mxu0 %v4680_v19  ;;  %v4716_v19 = vld [vmem:[#allocation8 + $0x174] ss:$8 sps:$4 sm:$0xff]  }
 0x26c   :  { %3442 = vmatpush1.bf16.msra.mxu0 %v4678_v58  ;;  %v4714_v58 = vld [vmem:[#allocation8 + $0x170] ss:$8 sps:$4 sm:$0xff]  }
 0x26d   :  { %3443 = vmatprep.subr.bf16.mxu0 %v4683_v59  ;;  %v4719_v59 = vld [vmem:[#allocation8 + $0x184] ss:$8 sps:$4 sm:$0xff]  }
 0x270   :  { %3444 = vmatpush1.bf16.msra.mxu0 %v4681_v60  ;;  %v4717_v60 = vld [vmem:[#allocation8 + $0x180] ss:$8 sps:$4 sm:$0xff]  }
 0x271   :  { %3445 = vmatprep.subr.bf16.mxu0 %v4686_v61  ;;  %v4722_v61 = vld [vmem:[#allocation8 + $0x194] ss:$8 sps:$4 sm:$0xff]  }
 0x274   :  { %3446 = vmatpush1.bf16.msra.mxu0 %v4684_v62  ;;  %v4720_v62 = vld [vmem:[#allocation8 + $0x190] ss:$8 sps:$4 sm:$0xff]  }
 0x275   :  { %3447 = vmatprep.subr.bf16.mxu0 %v4689_v63  ;;  %v4725_v63 = vld [vmem:[#allocation8 + $0x1a4] ss:$8 sps:$4 sm:$0xff]  }
 0x278   :  { %3448 = vmatpush1.bf16.msra.mxu0 %v4687_v0  ;;  %v4723_v0 = vld [vmem:[#allocation8 + $0x1a0] ss:$8 sps:$4 sm:$0xff]  }
 0x279   :  { %3449 = vmatprep.subr.bf16.mxu0 %v4692_v1  ;;  %v4728_v1 = vld [vmem:[#allocation8 + $0x1b4] ss:$8 sps:$4 sm:$0xff]  }
 0x27c   :  { %3450 = vmatpush1.bf16.msra.mxu0 %v4690_v2  ;;  %v4726_v2 = vld [vmem:[#allocation8 + $0x1b0] ss:$8 sps:$4 sm:$0xff]  }
 0x27d   :  { %3460 = vmatprep.subr.bf16.mxu0 %v4695_v18  ;;  %v4731_v18 = vld [vmem:[#allocation8 + $0x1c4] ss:$8 sps:$4 sm:$0xff]  }
 0x312   :  { %v2836_v25 = vpop.f32.mrb[4].mxu0  ;;  %v5092_v26 = vpop.f32.mrb[12].mxu1 }
 0x313   :  { %v4212_v27 = vadd.f32 %v2836_v25, %v1382_v22  ;;  %v2838_v30 = vpop.f32.mrb[5].mxu0  ;;  %v3002_v31 = vpop.f32.mrb[13].mxu1  ;;  %v4214_v9 = vadd.f32 %v5092_v26, %v1390_v6  ;;  %v4756_v22 = vld [vmem:[#allocation10 + $0x38] sm:$0xff]  }
 0x314   :  { %v4213_v32 = vadd.f32 %v2838_v30, %v1386_v23  ;;  %v4215_v13 = vadd.f32 %v3002_v31, %v1394_v24  ;;  %v2840_v33 = vpop.f32.mrb[6].mxu0  ;;  %v3004_v34 = vpop.f32.mrb[14].mxu1  ;;  %4205 = vmatpush3.bf16.msra.mxu1 %v4756_v22  ;;  %v3087_v23 = vld [vmem:[%s5118_s6] sm:$0x3] }
 0x315   :  { %vm3007_vm8 = vcmp.gt.f32.partialorder %v4212_v27, 0.0  ;;  %v3011_v35 = vmul.f32 0.2, %v4212_v27  ;;  %v2841_v38 = vpop.f32.mrb[7].mxu0  ;;  %v3005_v39 = vpop.f32.mrb[15].mxu1  ;;  %vm3009_vm11 = vcmp.gt.f32.partialorder %v4214_v9, 0.0  ;;  %v3092_v24 = vrot.slane %v3087_v23, %v5041_v12 }
 0x316   :  { %vm3008_vm9 = vcmp.gt.f32.partialorder %v4213_v32, 0.0  ;;  %v3012_v4 = vmul.f32 0.2, %v4213_v32  ;;  %vm3010_vm10 = vcmp.gt.f32.partialorder %v4215_v13, 0.0  ;;  %v3014_v36 = vmul.f32 0.2, %v4215_v13 }
 0x317   :  { %v3015_v37 = vsel %vm3007_vm8, %v4212_v27, %v3011_v35  ;;  %v3013_v15 = vmul.f32 0.2, %v4214_v9  ;;  %v3096_v25 = vrot.slane %v3087_v23, %v5049_v14  ;;  %v4171_v12 = vld [vmem:[%s5120_s8] ss:$0 sm:$0xff] }
 0x318   :  { %v3016_v29 = vsel %vm3008_vm9, %v4213_v32, %v3012_v4  ;;  %v3018_v40 = vsel %vm3010_vm10, %v4215_v13, %v3014_v36  ;;  %v3019_v43 = vpack.c.bf16 %v3015_v37, %v3015_v37 }
 0x319   :  { %v3020_v41 = vpack.c.bf16 %v3016_v29, %v3016_v29  ;;  %v3022_v45 = vpack.c.bf16 %v3018_v40, %v3018_v40  ;;  %v3017_v17 = vsel %vm3009_vm11, %v4214_v9, %v3013_v15 }
 0x31a   :  { %v3021_v11 = vpack.c.bf16 %v3017_v17, %v3017_v17 }
 0x31b   :  { %3451 = vmatprep.mubr.bf16.mxu0 %v3020_v41 }
 0x31c   :  { %3452 = vmatmul.mubr.bf16.vlgmr.msra.gmra.mrb[8].mxu0 %v3019_v43 }
 0x31d   :  { %3461 = vmatpush1.bf16.msra.mxu0 %v4693_v42  ;;  %3492 = vmatprep.mubr.bf16.mxu0 %v3022_v45  ;;  %v4188_v45 = vld [vmem:[%s5121_s9] ss:$0 sm:$0xff] }
 0x31e   :  { %3462 = vmatprep.subr.bf16.mxu0 %v4698_v44 }
 0x321   :  { %3463 = vmatpush1.bf16.msra.mxu0 %v4696_v46 }
 0x322   :  { %3464 = vmatprep.subr.bf16.mxu0 %v4701_v48 }
 0x325   :  { %3465 = vmatpush1.bf16.msra.mxu0 %v4699_v49  ;;  %v4189_v49 = vld [vmem:[#allocation2] ss:$0 sm:$0xff] }
 0x326   :  { %3466 = vmatprep.subr.bf16.mxu0 %v4704_v51 }
 0x329   :  { %3467 = vmatpush1.bf16.msra.mxu0 %v4702_v52 }
 0x32a   :  { %3468 = vmatprep.subr.bf16.mxu0 %v4707_v53 }
 0x32d   :  { %3469 = vmatpush1.bf16.msra.mxu0 %v4705_v50 }
 0x32e   :  { %3470 = vmatprep.subr.bf16.mxu0 %v4710_v54 }
 0x331   :  { %3471 = vmatpush1.bf16.msra.mxu0 %v4708_v56 }
 0x332   :  { %3472 = vmatprep.subr.bf16.mxu0 %v4713_v55 }
 0x335   :  { %3473 = vmatpush1.bf16.msra.mxu0 %v4711_v57 }
 0x336   :  { %3474 = vmatprep.subr.bf16.mxu0 %v4716_v19 }
 0x339   :  { %3475 = vmatpush1.bf16.msra.mxu0 %v4714_v58 }
 0x33a   :  { %3476 = vmatprep.subr.bf16.mxu0 %v4719_v59 }
 0x33d   :  { %3477 = vmatpush1.bf16.msra.mxu0 %v4717_v60 }
 0x33e   :  { %3478 = vmatprep.subr.bf16.mxu0 %v4722_v61 }
 0x341   :  { %3479 = vmatpush1.bf16.msra.mxu0 %v4720_v62 }
 0x342   :  { %3480 = vmatprep.subr.bf16.mxu0 %v4725_v63 }
 0x345   :  { %3481 = vmatpush1.bf16.msra.mxu0 %v4723_v0 }
 0x346   :  { %3482 = vmatprep.subr.bf16.mxu0 %v4728_v1 }
 0x349   :  { %3483 = vmatpush1.bf16.msra.mxu0 %v4726_v2 }
 0x34a   :  { %3484 = vmatprep.subr.bf16.mxu0 %v4731_v18 }
 0x34d   :  { %3485 = vmatpush1.bf16.msra.mxu0 %v4729_v3 }
 0x34e   :  { %3486 = vmatprep.subr.bf16.mxu0 %v4734_v5 }
 0x351   :  { %3487 = vmatpush1.bf16.msra.mxu0 %v4732_v7 }
 0x352   :  { %3488 = vmatprep.subr.bf16.mxu0 %v4737_v8 }
 0x355   :  { %3489 = vmatpush1.bf16.msra.mxu0 %v4735_v47 }
 0x356   :  { %3490 = vmatprep.subr.bf16.mxu0 %v4740_v10 }
 0x359   :  { %3491 = vmatpush1.bf16.msra.mxu0 %v4738_v16 }
 0x35c   :  { %3493 = vmatmul.mubr.bf16.vlgmr.msra.gmra.mrb[8].mxu0 %v3021_v11 }
 0x42f   :  { %v3494_v26 = vpop.f32.mrb[8].mxu0 }
 0x430   :  { %v4216_v27 = vadd.f32 %v3494_v26, %v3092_v24  ;;  %v3496_v30 = vpop.f32.mrb[9].mxu0 }
 0x431   :  { %v4217_v31 = vadd.f32 %v3496_v30, %v3096_v25  ;;  %v3498_v32 = vpop.f32.mrb[10].mxu0 }
 0x432   :  { %vm3501_vm12 = vcmp.gt.f32.partialorder %v4216_v27, 0.0  ;;  %v3503_v13 = vmul.f32 0.2, %v4216_v27  ;;  %v3499_v33 = vpop.f32.mrb[11].mxu0 }
 0x433   :  { %vm3502_vm13 = vcmp.gt.f32.partialorder %v4217_v31, 0.0  ;;  %v3504_v34 = vmul.f32 0.2, %v4217_v31 }
 0x434   :  { %v3505_v35 = vsel %vm3501_vm12, %v4216_v27, %v3503_v13 }
 0x435   :  { %v3506_v4 = vsel %vm3502_vm13, %v4217_v31, %v3504_v34  ;;  %v3507_v37 = vpack.c.bf16 %v3505_v35, %v3505_v35 }
 0x436   :  { %v3508_v36 = vpack.c.bf16 %v3506_v4, %v3506_v4 }
 0x438   :  { %3676 = vmatprep.mubr.bf16.mxu1 %v3508_v36 }
 0x439   :  { %3677 = vmatmul.mubr.bf16.vlgmr.msra.gmra.mrb[16].mxu1 %v3507_v37 }
 0x50c   :  { %v4206_v38 = vpop.f32.mrb[16].mxu1 }
 0x50d   :  { %v4207_v14 = vpop.f32.mrb[17].mxu1 }
 0x50e   :  { %v4208_v39 = vadd.f32 %v4207_v14, %v4206_v38  ;;  %v4209_v29 = vpop.f32.mrb[18].mxu1 }
 0x50f   :  { %v4210_v40 = vpop.f32.mrb[19].mxu1 }
 0x510   :  { %v3679_v41 = vadd.f32 %v4208_v39, %v4171_v12 }
 0x512   :  { %v3685_v42 = vmul.f32 0.2, %v3679_v41  ;;  %vm3684_vm14 = vcmp.gt.f32.partialorder %v3679_v41, 0.0 }
 0x514   :  { %v3686_v43 = vsel %vm3684_vm14, %v3679_v41, %v3685_v42 }
 0x515   :  { %v3687_v44 = vpack.c.bf16 %v3686_v43, %v3686_v43 }
 0x517   :  { %v3688_v46 = vunpack.c.l.bf16 %v3687_v44 }
 0x519   :  { %v3696_v48 = vmul.f32 %v4188_v45, %v3688_v46 }
 0x51b   :  { %3697 = vadd.xlane.f32.xlu0 %v3696_v48 }
 0x5a8   :  { %v3698_v51 = vpop.xlane.xlu0 %3697 }
 0x5a9   :  { %v3706_v52 = vadd.f32 %v4189_v49, %v3698_v51 }
 0x5ab   :  { %v3707_v53 = vsub.f32 0.0, %v3706_v52 }
 0x5ad   :  { %v3708_v50 = vmul.f32 1.442695, %v3707_v53 }
 0x5af   :  { %4757 = vpow2.f32 %v3708_v50 }
 0x5b9   :  { %v4758_v54 = vpop.eup %4757 }
 0x5ba   :  { %v3710_v56 = vadd.f32 1.0, %v4758_v54 }
 0x5bc   :  { %4759 = vrcp.f32 %v3710_v56 }
 0x5c6   :  { %v4760_v55 = vpop.eup %4759 }
 0x5c7   :  { %3713 = vst.msk [vmem:[%s5123_s11] sm:$0xff] %vm3712_vm15, %v4760_v55 }
 0x5c8   :  { %3718 = vsyncpa [#allocation4], 1 }
 0x5c9   :  { %3719 = vsyncpa [#allocation6], 1 }
 0x5ca   :  { %3720 = vsyncpa [#allocation9], 1 }

</bundles_post_ra>
